<compile_context>
chip_gen: v7x
topology: tpu7x:2x2x1
jax: 0.10.0
libtpu: 0.0.40
codegen_flags: <defaults>
</compile_context>

<pallas_src>
import functools

import jax
import jax.numpy as jnp
from jax.experimental import pallas as pl
from jax.experimental.pallas import tpu as pltpu

_REFS_PER_LAYER = 10   # src_col, dst_col, dst_row, wq, bq, wa_s, wa_t, wa_c, ww, bw
_PAD_IDX = 2 ** 30     # out-of-range node index -> all-zero one-hot row/column
_EDGE_ALIGN = 16       # bf16 sublane tile


def _one_hot(eq_bool, dtype):
    return jnp.where(eq_bool, 1.0, 0.0).astype(dtype)


def _conv_layer(h, n_dst, e_true, ctx, src_col, dst_col, dst_row,
                wq, bq, wa_s, wa_t, wa_c, ww, bw, num_heads):
    """One MultiSAGEConv layer on in-VMEM values (attn_index=None path)."""
    f32 = jnp.float32
    bf16 = jnp.bfloat16
    n_src = h.shape[0]
    e_pad = ctx.shape[0]
    h_bf = h.astype(bf16)

    # Dropout == identity. z_src = relu(Q(h_src)); z_c = relu(context).
    z_src = jnp.maximum(
        jnp.dot(h_bf, wq, preferred_element_type=f32) + bq, 0.0)           # (N_src, H)
    z_c = jnp.maximum(ctx.astype(f32), 0.0)                                # (E, H) f32
    z_c_bf = z_c.astype(bf16)                                              # exact (ctx was bf16)

    # Incidence one-hots built in-kernel from int32 indices; gather / scatter
    # ride the MXU as bf16 matmuls with f32 accumulation. Padded edges have
    # out-of-range indices -> all-zero rows/columns.
    iota_src = jax.lax.broadcasted_iota(jnp.int32, (e_pad, n_src), 1)
    iota_dst = jax.lax.broadcasted_iota(jnp.int32, (e_pad, n_dst), 1)
    iota_dst_t = jax.lax.broadcasted_iota(jnp.int32, (n_dst, e_pad), 0)
    S = _one_hot(iota_src == src_col, bf16)      # (E, N_src) edge -> src node
    G = _one_hot(iota_src == dst_col, bf16)      # (E, N_src) edge -> dst node (dst < n_dst)
    d_bool = iota_dst == dst_col                 # (E, N_dst)
    D = _one_hot(d_bool, bf16)                   # (E, N_dst)
    Dt = _one_hot(iota_dst_t == dst_row, bf16)   # (N_dst, E)

    z_src_e = jnp.dot(S, z_src.astype(bf16), preferred_element_type=f32)   # (E, H)
    z_t_e = jnp.dot(G, h_bf, preferred_element_type=f32)                   # (E, H)

    # Additive attention; wa pre-sliced -> no (E, 3H) concat is materialised.
    attn = (jnp.dot(z_src_e.astype(bf16), wa_s, preferred_element_type=f32)
            + jnp.dot(z_t_e.astype(bf16), wa_t, preferred_element_type=f32)
            + jnp.dot(z_c_bf, wa_c, preferred_element_type=f32))           # (E, heads)
    attn = jnp.where(attn >= 0.0, attn, 0.01 * attn)                       # leaky_relu

    # Edge softmax per destination, stabilised with the per-destination max
    # (constant inside every group -> cancels exactly). heads is tiny, so a
    # static python loop of 2-D masked reduces in the (E, N_dst) orientation.
    big_neg = jnp.float32(-1e30)
    m_cols = []
    for hh in range(num_heads):
        att_h = attn[:, hh:hh + 1]                                         # (E, 1)
        grp_max = jnp.max(jnp.where(d_bool, att_h, big_neg),
                          axis=0, keepdims=True)                           # (1, N_dst)
        m_cols.append(jnp.sum(jnp.where(d_bool, grp_max, 0.0),
                              axis=1, keepdims=True))                      # (E, 1)
    m_e = jnp.concatenate(m_cols, axis=1)                                  # (E, heads)

    ex = jnp.exp(attn - m_e)                                               # (E, heads) EUP
    ssum = jnp.dot(Dt, ex.astype(bf16), preferred_element_type=f32)        # (N_dst, heads)
    s_e = jnp.dot(D, ssum.astype(bf16), preferred_element_type=f32)        # (E, heads)
    inv_s = jnp.where(s_e > 0.0, pl.reciprocal(s_e, approx=True), 0.0)     # guards padded edges
    a = ex * inv_s

    # Mean over heads with the reference's 1/E (true edge count) folded in.
    a_mean = jnp.sum(a, axis=1, keepdims=True) * (1.0 / (num_heads * e_true))  # (E, 1)
    w_e = z_c * a_mean                                                     # (E, H)

    # Messages and FUSED scatter: one (N_dst,E) @ (E,2H) matmul gives feat.
    msg = jnp.concatenate([(z_src_e * w_e).astype(bf16),
                           (z_t_e * w_e).astype(bf16)], axis=1)            # (E, 2H)
    feat = jnp.dot(Dt, msg, preferred_element_type=f32)                    # (N_dst, 2H)

    z = jnp.maximum(
        jnp.dot(feat.astype(bf16), ww, preferred_element_type=f32) + bw, 0.0)

    # Row-wise L2 normalisation (zero norm -> 1); rsqrt runs on the EUP.
    sq = jnp.sum(z * z, axis=1, keepdims=True)
    inv_norm = jnp.where(sq == 0.0, 1.0, jax.lax.rsqrt(sq))
    return z * inv_norm


def _multisage_net_kernel(layer_cfg, num_heads, h_ref, ctx_hbm_ref, *refs):
    """Whole MultiSAGENet forward; all layers fused in one invocation."""
    n_layers = len(layer_cfg)
    flat = refs[:n_layers * _REFS_PER_LAYER]
    out_ref = refs[n_layers * _REFS_PER_LAYER]
    ctx_buf = refs[n_layers * _REFS_PER_LAYER + 1]
    ctx_sem = refs[n_layers * _REFS_PER_LAYER + 2]

    # Kick off every layer's context DMA up front: layer l+1's HBM->VMEM copy
    # overlaps layer l's compute (one VMEM slot per layer; fine for shallow
    # nets; rotate 2-deep buffers for deep ones).
    copies = []
    for l in range(n_layers):
        cp = pltpu.make_async_copy(ctx_hbm_ref.at[l], ctx_buf.at[l], ctx_sem.at[l])
        cp.start()
        copies.append(cp)

    h = h_ref[...]                                        # bf16, no dead f32 upcast
    for l, (n_dst, e_true, e_pad) in enumerate(layer_cfg):
        copies[l].wait()
        ctx = ctx_buf[l][:e_pad]                          # (E_pad, H) bf16
        (src_col, dst_col, dst_row, wq, bq, wa_s, wa_t, wa_c, ww, bw) = [
            r[...] for r in flat[l * _REFS_PER_LAYER:(l + 1) * _REFS_PER_LAYER]]
        h = _conv_layer(h, n_dst, e_true, ctx, src_col, dst_col, dst_row,
                        wq, bq, wa_s, wa_t, wa_c, ww, bw, num_heads)
    out_ref[...] = h.astype(out_ref.dtype)


def _round_up(n, m):
    return ((n + m - 1) // m) * m


def multisage_net(h, layer_inputs, layer_params, num_heads):
    """MultiSAGENet.forward via one pallas_call fusing all layers.

    layer_inputs[l]: dict(n_dst, ctx (E,H) f32, src (E,) int, dst (E,) int)
    layer_params[l]: dict(wq (H,H), bq (1,H), wa (3H,heads), ww (2H,H), bw (1,H)) f32
    """
    hidden = h.shape[1]
    n_layers = len(layer_inputs)
    e_pads = [_round_up(inp['ctx'].shape[0], _EDGE_ALIGN) for inp in layer_inputs]
    e_max = max(e_pads)

    h_bf = h.astype(jnp.bfloat16)
    ctx_stack, flat, layer_cfg = [], [], []
    for inp, par, e_pad in zip(layer_inputs, layer_params, e_pads):
        n_dst = int(inp['n_dst'])
        ctx = inp['ctx'].astype(jnp.bfloat16)
        e_true = ctx.shape[0]
        pad = e_pad - e_true
        src = jnp.pad(inp['src'].astype(jnp.int32), (0, pad), constant_values=_PAD_IDX)
        dst = jnp.pad(inp['dst'].astype(jnp.int32), (0, pad), constant_values=_PAD_IDX)
        ctx_stack.append(jnp.pad(ctx, ((0, e_max - e_true), (0, 0))))
        wa = par['wa'].astype(jnp.bfloat16)
        flat.extend([
            src[:, None], dst[:, None], dst[None, :],            # int32 index vectors
            par['wq'].astype(jnp.bfloat16), par['bq'].astype(jnp.float32),
            wa[:hidden], wa[hidden:2 * hidden], wa[2 * hidden:],  # pre-sliced attention W
            par['ww'].astype(jnp.bfloat16), par['bw'].astype(jnp.float32)])
        layer_cfg.append((n_dst, e_true, e_pad))
    ctx_hbm = jnp.stack(ctx_stack)                                # (L, E_max, H) bf16

    vmem_spec = pl.BlockSpec(memory_space=pltpu.MemorySpace.VMEM)
    any_spec = pl.BlockSpec(memory_space=pl.ANY)                  # ctx stays in HBM

    arrays = [h_bf, ctx_hbm] + flat
    in_bytes = sum(int(x.size) * x.dtype.itemsize for x in arrays)
    # Explicit scoped-VMEM budget (16 MiB default on v5e would be the binding
    # constraint first); clamp well under v7x's 64 MiB physical per-TC VMEM.
    vmem_limit = int(min(max(8 * in_bytes + (4 << 20), 16 << 20), 64 << 20))

    kernel = functools.partial(_multisage_net_kernel, tuple(layer_cfg), num_heads)
    return pl.pallas_call(
        kernel,
        out_shape=jax.ShapeDtypeStruct((layer_cfg[-1][0], hidden), jnp.float32),
        in_specs=[vmem_spec, any_spec] + [vmem_spec] * len(flat),
        out_specs=vmem_spec,
        scratch_shapes=[pltpu.VMEM((n_layers, e_max, hidden), jnp.bfloat16),
                        pltpu.SemaphoreType.DMA((n_layers,))],
        compiler_params=pltpu.CompilerParams(vmem_limit_bytes=vmem_limit),
    )(*arrays)


def init_layer_params(key, hidden, num_heads):
    """Xavier-ish init matching the torch parameter shapes (pre-transposed)."""
    k = jax.random.split(key, 3)
    gain = 2.0 ** 0.5
    # Q: torch Linear(H, H); weight (H,H), bias (H,). Passed pre-transposed.
    wq = (gain * (2.0 / (2 * hidden)) ** 0.5
          * jax.random.normal(k[0], (hidden, hidden), jnp.float32))
    bq = jnp.zeros((1, hidden), jnp.float32)
    # per-head additive_attn_fc: Linear(3H, 1, bias=False); heads stacked then
    # transposed -> (3H, heads), rows ordered [z_src | z_t | z_c].
    wa = (gain * (2.0 / (3 * hidden + 1)) ** 0.5
          * jax.random.normal(k[1], (3 * hidden, num_heads), jnp.float32))
    # W: torch Linear(2H, H); weight (H, 2H). Passed pre-transposed -> (2H, H).
    ww = (gain * (2.0 / (3 * hidden)) ** 0.5
          * jax.random.normal(k[2], (2 * hidden, hidden), jnp.float32))
    bw = jnp.zeros((1, hidden), jnp.float32)
    return dict(wq=wq, bq=bq, wa=wa, ww=ww, bw=bw)


def _reference_conv(h, n_dst, ctx, src, dst, params, num_heads):
    """Pure-JAX f32 reference of one MultiSAGEConv layer (attn_index=None)."""
    h_dst = h[:n_dst]
    z_src = jax.nn.relu(h @ params['wq'] + params['bq'])
    z_c = jax.nn.relu(ctx)
    z_src_e = z_src[src]
    z_t_e = h_dst[dst]
    x = jnp.concatenate([z_src_e, z_t_e, z_c], axis=1)
    attn = x @ params['wa']
    attn = jnp.where(attn >= 0.0, attn, 0.01 * attn)
    m = jax.ops.segment_max(attn, dst, num_segments=n_dst)
    ex = jnp.exp(attn - m[dst])
    s = jax.ops.segment_sum(ex, dst, num_segments=n_dst)
    a = ex / s[dst]
    a_mean = jnp.mean(a, axis=1, keepdims=True)
    n_edges = ctx.shape[0]
    ns = jax.ops.segment_sum(z_src_e * z_c * a_mean, dst, num_segments=n_dst) / n_edges
    ts = jax.ops.segment_sum(z_t_e * z_c * a_mean, dst, num_segments=n_dst) / n_edges
    z = jax.nn.relu(jnp.concatenate([ns, ts], axis=1) @ params['ww'] + params['bw'])
    zn = jnp.sqrt(jnp.sum(z * z, axis=1, keepdims=True))
    zn = jnp.where(zn == 0.0, 1.0, zn)
    return z / zn


if __name__ == "__main__":
    hidden_dims = 128      # matches the reference module's hidden_dims
    gat_num_heads = 3

    key = jax.random.PRNGKey(0)
    k_h, k_c0, k_c1, k_p0, k_p1 = jax.random.split(key, 5)

    # Layer 0: 12 src -> 8 dst over 24 edges; layer 1: 8 src -> 4 dst over 16 edges.
    sizes = [(12, 8, 24), (8, 4, 16)]
    ctx_keys = [k_c0, k_c1]
    par_keys = [k_p0, k_p1]

    layer_inputs, layer_params = [], []
    for (n_src, n_dst, n_edges), kc, kp in zip(sizes, ctx_keys, par_keys):
        e = jnp.arange(n_edges, dtype=jnp.int32)
        dst = e % n_dst                      # every destination has >= 1 edge
        src = (e * 5 + 1) % n_src
        ctx = jax.random.normal(kc, (n_edges, hidden_dims), jnp.float32)
        layer_inputs.append(dict(n_dst=n_dst, ctx=ctx, src=src, dst=dst))
        layer_params.append(init_layer_params(kp, hidden_dims, gat_num_heads))

    h = jax.random.normal(k_h, (sizes[0][0], hidden_dims), jnp.float32)

    out = multisage_net(h, layer_inputs, layer_params, gat_num_heads)
    out = jax.block_until_ready(out)

    # Pure-JAX f32 reference sanity check (kernel matmuls run in bf16).
    h_ref = h
    for inp, par in zip(layer_inputs, layer_params):
        h_ref = _reference_conv(h_ref, inp['n_dst'], inp['ctx'], inp['src'],
                                inp['dst'], par, gat_num_heads)

    assert out.shape == (sizes[-1][1], hidden_dims)
    assert bool(jnp.all(jnp.isfinite(out)))
    err = float(jnp.max(jnp.abs(out - h_ref)))
    assert err < 0.1, err
    print("KERNEL_OK")
</pallas_src>

<mosaic_0001>
module attributes {stable_mosaic.version = 11 : i64} {
  func.func @_multisage_net_kernel(%arg0: memref<12x128xbf16, #tpu.memory_space<vmem>>, %arg1: memref<2x32x128xbf16, #tpu.memory_space<any>>, %arg2: memref<32x1xi32, #tpu.memory_space<vmem>>, %arg3: memref<32x1xi32, #tpu.memory_space<vmem>>, %arg4: memref<1x32xi32, #tpu.memory_space<vmem>>, %arg5: memref<128x128xbf16, #tpu.memory_space<vmem>>, %arg6: memref<1x128xf32, #tpu.memory_space<vmem>>, %arg7: memref<128x3xbf16, #tpu.memory_space<vmem>>, %arg8: memref<128x3xbf16, #tpu.memory_space<vmem>>, %arg9: memref<128x3xbf16, #tpu.memory_space<vmem>>, %arg10: memref<256x128xbf16, #tpu.memory_space<vmem>>, %arg11: memref<1x128xf32, #tpu.memory_space<vmem>>, %arg12: memref<16x1xi32, #tpu.memory_space<vmem>>, %arg13: memref<16x1xi32, #tpu.memory_space<vmem>>, %arg14: memref<1x16xi32, #tpu.memory_space<vmem>>, %arg15: memref<128x128xbf16, #tpu.memory_space<vmem>>, %arg16: memref<1x128xf32, #tpu.memory_space<vmem>>, %arg17: memref<128x3xbf16, #tpu.memory_space<vmem>>, %arg18: memref<128x3xbf16, #tpu.memory_space<vmem>>, %arg19: memref<128x3xbf16, #tpu.memory_space<vmem>>, %arg20: memref<256x128xbf16, #tpu.memory_space<vmem>>, %arg21: memref<1x128xf32, #tpu.memory_space<vmem>>, %arg22: memref<4x128xf32, #tpu.memory_space<vmem>>, %arg23: memref<2x32x128xbf16, #tpu.memory_space<vmem>>, %arg24: memref<2x!tpu.dma_semaphore, #tpu.memory_space<semaphore_mem>>) attributes {dimension_semantics = [], scalar_prefetch = 0 : i64, scratch_operands = 2 : i64, tpu.core_type = #tpu.core_type<tc>} {
    %c0_i32 = arith.constant 0 : i32
    %c0_i32_0 = arith.constant 0 : i32
    %c0_i32_1 = arith.constant 0 : i32
    %c0_i32_2 = arith.constant 0 : i32
    %c0_i32_3 = arith.constant 0 : i32
    %0 = tpu.memref_slice %arg1[%c0_i32, %c0_i32_2, %c0_i32_3] : memref<2x32x128xbf16, #tpu.memory_space<any>> -> memref<1x32x128xbf16, #tpu.memory_space<any>>
    %1 = tpu.memref_squeeze %0 : memref<1x32x128xbf16, #tpu.memory_space<any>> -> memref<32x128xbf16, #tpu.memory_space<any>>
    %c0_i32_4 = arith.constant 0 : i32
    %c0_i32_5 = arith.constant 0 : i32
    %2 = tpu.memref_slice %arg23[%c0_i32_0, %c0_i32_4, %c0_i32_5] : memref<2x32x128xbf16, #tpu.memory_space<vmem>> -> memref<1x32x128xbf16, #tpu.memory_space<vmem>>
    %3 = tpu.memref_squeeze %2 : memref<1x32x128xbf16, #tpu.memory_space<vmem>> -> memref<32x128xbf16, #tpu.memory_space<vmem>>
    %4 = tpu.memref_slice %arg24[%c0_i32_1] : memref<2x!tpu.dma_semaphore, #tpu.memory_space<semaphore_mem>> -> memref<1x!tpu.dma_semaphore, #tpu.memory_space<semaphore_mem>>
    %5 = tpu.memref_squeeze %4 : memref<1x!tpu.dma_semaphore, #tpu.memory_space<semaphore_mem>> -> memref<!tpu.dma_semaphore, #tpu.memory_space<semaphore_mem>>
    tpu.enqueue_dma source(%1 : memref<32x128xbf16, #tpu.memory_space<any>>) target(%3 : memref<32x128xbf16, #tpu.memory_space<vmem>>) target_semaphore(%5 : memref<!tpu.dma_semaphore, #tpu.memory_space<semaphore_mem>>)
    %c1_i32 = arith.constant 1 : i32
    %c1_i32_6 = arith.constant 1 : i32
    %c1_i32_7 = arith.constant 1 : i32
    %c0_i32_8 = arith.constant 0 : i32
    %c0_i32_9 = arith.constant 0 : i32
    %6 = tpu.memref_slice %arg1[%c1_i32, %c0_i32_8, %c0_i32_9] : memref<2x32x128xbf16, #tpu.memory_space<any>> -> memref<1x32x128xbf16, #tpu.memory_space<any>>
    %7 = tpu.memref_squeeze %6 : memref<1x32x128xbf16, #tpu.memory_space<any>> -> memref<32x128xbf16, #tpu.memory_space<any>>
    %c0_i32_10 = arith.constant 0 : i32
    %c0_i32_11 = arith.constant 0 : i32
    %8 = tpu.memref_slice %arg23[%c1_i32_6, %c0_i32_10, %c0_i32_11] : memref<2x32x128xbf16, #tpu.memory_space<vmem>> -> memref<1x32x128xbf16, #tpu.memory_space<vmem>>
    %9 = tpu.memref_squeeze %8 : memref<1x32x128xbf16, #tpu.memory_space<vmem>> -> memref<32x128xbf16, #tpu.memory_space<vmem>>
    %10 = tpu.memref_slice %arg24[%c1_i32_7] : memref<2x!tpu.dma_semaphore, #tpu.memory_space<semaphore_mem>> -> memref<1x!tpu.dma_semaphore, #tpu.memory_space<semaphore_mem>>
    %11 = tpu.memref_squeeze %10 : memref<1x!tpu.dma_semaphore, #tpu.memory_space<semaphore_mem>> -> memref<!tpu.dma_semaphore, #tpu.memory_space<semaphore_mem>>
    tpu.enqueue_dma source(%7 : memref<32x128xbf16, #tpu.memory_space<any>>) target(%9 : memref<32x128xbf16, #tpu.memory_space<vmem>>) target_semaphore(%11 : memref<!tpu.dma_semaphore, #tpu.memory_space<semaphore_mem>>)
    %c0 = arith.constant 0 : index
    %c0_12 = arith.constant 0 : index
    %12 = vector.load %arg0[%c0, %c0_12] : memref<12x128xbf16, #tpu.memory_space<vmem>>, vector<12x128xbf16>
    %c0_i32_13 = arith.constant 0 : i32
    %c0_i32_14 = arith.constant 0 : i32
    %c0_i32_15 = arith.constant 0 : i32
    %c0_i32_16 = arith.constant 0 : i32
    %c0_i32_17 = arith.constant 0 : i32
    %13 = tpu.memref_slice %arg1[%c0_i32_13, %c0_i32_16, %c0_i32_17] : memref<2x32x128xbf16, #tpu.memory_space<any>> -> memref<1x32x128xbf16, #tpu.memory_space<any>>
    %14 = tpu.memref_squeeze %13 : memref<1x32x128xbf16, #tpu.memory_space<any>> -> memref<32x128xbf16, #tpu.memory_space<any>>
    %c0_i32_18 = arith.constant 0 : i32
    %c0_i32_19 = arith.constant 0 : i32
    %15 = tpu.memref_slice %arg23[%c0_i32_14, %c0_i32_18, %c0_i32_19] : memref<2x32x128xbf16, #tpu.memory_space<vmem>> -> memref<1x32x128xbf16, #tpu.memory_space<vmem>>
    %16 = tpu.memref_squeeze %15 : memref<1x32x128xbf16, #tpu.memory_space<vmem>> -> memref<32x128xbf16, #tpu.memory_space<vmem>>
    %17 = tpu.memref_slice %arg24[%c0_i32_15] : memref<2x!tpu.dma_semaphore, #tpu.memory_space<semaphore_mem>> -> memref<1x!tpu.dma_semaphore, #tpu.memory_space<semaphore_mem>>
    %18 = tpu.memref_squeeze %17 : memref<1x!tpu.dma_semaphore, #tpu.memory_space<semaphore_mem>> -> memref<!tpu.dma_semaphore, #tpu.memory_space<semaphore_mem>>
    tpu.wait_dma2 semaphore(%18 : memref<!tpu.dma_semaphore, #tpu.memory_space<semaphore_mem>>) src(%14 : memref<32x128xbf16, #tpu.memory_space<any>>) dst(%16 : memref<32x128xbf16, #tpu.memory_space<vmem>>)
    %c0_20 = arith.constant 0 : index
    %c0_21 = arith.constant 0 : index
    %c0_22 = arith.constant 0 : index
    %19 = vector.load %arg23[%c0_20, %c0_21, %c0_22] : memref<2x32x128xbf16, #tpu.memory_space<vmem>>, vector<1x32x128xbf16>
    %20 = vector.shape_cast %19 : vector<1x32x128xbf16> to vector<32x128xbf16>
    %c0_23 = arith.constant 0 : index
    %c0_24 = arith.constant 0 : index
    %21 = vector.load %arg2[%c0_23, %c0_24] : memref<32x1xi32, #tpu.memory_space<vmem>>, vector<32x1xi32>
    %c0_25 = arith.constant 0 : index
    %c0_26 = arith.constant 0 : index
    %22 = vector.load %arg3[%c0_25, %c0_26] : memref<32x1xi32, #tpu.memory_space<vmem>>, vector<32x1xi32>
    %c0_27 = arith.constant 0 : index
    %c0_28 = arith.constant 0 : index
    %23 = vector.load %arg4[%c0_27, %c0_28] : memref<1x32xi32, #tpu.memory_space<vmem>>, vector<1x32xi32>
    %c0_29 = arith.constant 0 : index
    %c0_30 = arith.constant 0 : index
    %24 = vector.load %arg5[%c0_29, %c0_30] : memref<128x128xbf16, #tpu.memory_space<vmem>>, vector<128x128xbf16>
    %c0_31 = arith.constant 0 : index
    %c0_32 = arith.constant 0 : index
    %25 = vector.load %arg6[%c0_31, %c0_32] : memref<1x128xf32, #tpu.memory_space<vmem>>, vector<1x128xf32>
    %c0_33 = arith.constant 0 : index
    %c0_34 = arith.constant 0 : index
    %26 = vector.load %arg7[%c0_33, %c0_34] : memref<128x3xbf16, #tpu.memory_space<vmem>>, vector<128x3xbf16>
    %c0_35 = arith.constant 0 : index
    %c0_36 = arith.constant 0 : index
    %27 = vector.load %arg8[%c0_35, %c0_36] : memref<128x3xbf16, #tpu.memory_space<vmem>>, vector<128x3xbf16>
    %c0_37 = arith.constant 0 : index
    %c0_38 = arith.constant 0 : index
    %28 = vector.load %arg9[%c0_37, %c0_38] : memref<128x3xbf16, #tpu.memory_space<vmem>>, vector<128x3xbf16>
    %c0_39 = arith.constant 0 : index
    %c0_40 = arith.constant 0 : index
    %29 = vector.load %arg10[%c0_39, %c0_40] : memref<256x128xbf16, #tpu.memory_space<vmem>>, vector<256x128xbf16>
    %c0_41 = arith.constant 0 : index
    %c0_42 = arith.constant 0 : index
    %30 = vector.load %arg11[%c0_41, %c0_42] : memref<1x128xf32, #tpu.memory_space<vmem>>, vector<1x128xf32>
    %cst = arith.constant dense<0.000000e+00> : vector<12x128xf32>
    %31 = tpu.matmul %12, %24, %cst {dimension_numbers = #tpu.dot_dimension_numbers<[1], [0], [0], [1], [0, 0, 1, 1], [], []>} : vector<12x128xbf16>, vector<128x128xbf16>, vector<12x128xf32> -> vector<12x128xf32>
    %32 = vector.broadcast %25 : vector<1x128xf32> to vector<12x128xf32>
    %33 = arith.addf %31, %32 : vector<12x128xf32>
    %cst_43 = arith.constant 0.000000e+00 : f32
    %34 = vector.broadcast %cst_43 : f32 to vector<12x128xf32>
    %35 = arith.maximumf %33, %34 : vector<12x128xf32>
    %36 = arith.extf %20 : vector<32x128xbf16> to vector<32x128xf32>
    %cst_44 = arith.constant 0.000000e+00 : f32
    %37 = vector.broadcast %cst_44 : f32 to vector<32x128xf32>
    %38 = arith.maximumf %36, %37 : vector<32x128xf32>
    %39 = arith.truncf %38 : vector<32x128xf32> to vector<32x128xbf16>
    %40 = tpu.iota {dimensions = array<i32: 1>} : vector<32x12xi32>
    %41 = tpu.iota {dimensions = array<i32: 1>} : vector<32x8xi32>
    %42 = tpu.iota {dimensions = array<i32: 0>} : vector<8x32xi32>
    %43 = vector.broadcast %21 : vector<32x1xi32> to vector<32x12xi32>
    %44 = arith.cmpi eq, %40, %43 : vector<32x12xi32>
    %cst_45 = arith.constant 1.000000e+00 : f32
    %cst_46 = arith.constant 0.000000e+00 : f32
    %45 = vector.broadcast %cst_45 : f32 to vector<32x12xf32>
    %46 = vector.broadcast %cst_46 : f32 to vector<32x12xf32>
    %47 = arith.select %44, %45, %46 : vector<32x12xi1>, vector<32x12xf32>
    %48 = arith.truncf %47 : vector<32x12xf32> to vector<32x12xbf16>
    %49 = vector.broadcast %22 : vector<32x1xi32> to vector<32x12xi32>
    %50 = arith.cmpi eq, %40, %49 : vector<32x12xi32>
    %cst_47 = arith.constant 1.000000e+00 : f32
    %cst_48 = arith.constant 0.000000e+00 : f32
    %51 = vector.broadcast %cst_47 : f32 to vector<32x12xf32>
    %52 = vector.broadcast %cst_48 : f32 to vector<32x12xf32>
    %53 = arith.select %50, %51, %52 : vector<32x12xi1>, vector<32x12xf32>
    %54 = arith.truncf %53 : vector<32x12xf32> to vector<32x12xbf16>
    %55 = vector.broadcast %22 : vector<32x1xi32> to vector<32x8xi32>
    %56 = arith.cmpi eq, %41, %55 : vector<32x8xi32>
    %cst_49 = arith.constant 1.000000e+00 : f32
    %cst_50 = arith.constant 0.000000e+00 : f32
    %57 = vector.broadcast %cst_49 : f32 to vector<32x8xf32>
    %58 = vector.broadcast %cst_50 : f32 to vector<32x8xf32>
    %59 = arith.select %56, %57, %58 : vector<32x8xi1>, vector<32x8xf32>
    %60 = arith.truncf %59 : vector<32x8xf32> to vector<32x8xbf16>
    %61 = vector.broadcast %23 : vector<1x32xi32> to vector<8x32xi32>
    %62 = arith.cmpi eq, %42, %61 : vector<8x32xi32>
    %cst_51 = arith.constant 1.000000e+00 : f32
    %cst_52 = arith.constant 0.000000e+00 : f32
    %63 = vector.broadcast %cst_51 : f32 to vector<8x32xf32>
    %64 = vector.broadcast %cst_52 : f32 to vector<8x32xf32>
    %65 = arith.select %62, %63, %64 : vector<8x32xi1>, vector<8x32xf32>
    %66 = arith.truncf %65 : vector<8x32xf32> to vector<8x32xbf16>
    %67 = arith.truncf %35 : vector<12x128xf32> to vector<12x128xbf16>
    %cst_53 = arith.constant dense<0.000000e+00> : vector<32x128xf32>
    %68 = tpu.matmul %48, %67, %cst_53 {dimension_numbers = #tpu.dot_dimension_numbers<[1], [0], [0], [1], [0, 0, 1, 1], [], []>} : vector<32x12xbf16>, vector<12x128xbf16>, vector<32x128xf32> -> vector<32x128xf32>
    %cst_54 = arith.constant dense<0.000000e+00> : vector<32x128xf32>
    %69 = tpu.matmul %54, %12, %cst_54 {dimension_numbers = #tpu.dot_dimension_numbers<[1], [0], [0], [1], [0, 0, 1, 1], [], []>} : vector<32x12xbf16>, vector<12x128xbf16>, vector<32x128xf32> -> vector<32x128xf32>
    %70 = arith.truncf %68 : vector<32x128xf32> to vector<32x128xbf16>
    %cst_55 = arith.constant dense<0.000000e+00> : vector<32x3xf32>
    %71 = tpu.matmul %70, %26, %cst_55 {dimension_numbers = #tpu.dot_dimension_numbers<[1], [0], [0], [1], [0, 0, 1, 1], [], []>} : vector<32x128xbf16>, vector<128x3xbf16>, vector<32x3xf32> -> vector<32x3xf32>
    %72 = arith.truncf %69 : vector<32x128xf32> to vector<32x128xbf16>
    %cst_56 = arith.constant dense<0.000000e+00> : vector<32x3xf32>
    %73 = tpu.matmul %72, %27, %cst_56 {dimension_numbers = #tpu.dot_dimension_numbers<[1], [0], [0], [1], [0, 0, 1, 1], [], []>} : vector<32x128xbf16>, vector<128x3xbf16>, vector<32x3xf32> -> vector<32x3xf32>
    %74 = arith.addf %71, %73 : vector<32x3xf32>
    %cst_57 = arith.constant dense<0.000000e+00> : vector<32x3xf32>
    %75 = tpu.matmul %39, %28, %cst_57 {dimension_numbers = #tpu.dot_dimension_numbers<[1], [0], [0], [1], [0, 0, 1, 1], [], []>} : vector<32x128xbf16>, vector<128x3xbf16>, vector<32x3xf32> -> vector<32x3xf32>
    %76 = arith.addf %74, %75 : vector<32x3xf32>
    %cst_58 = arith.constant 0.000000e+00 : f32
    %77 = vector.broadcast %cst_58 : f32 to vector<32x3xf32>
    %78 = arith.cmpf oge, %76, %77 : vector<32x3xf32>
    %cst_59 = arith.constant 0.00999999977 : f32
    %79 = vector.broadcast %cst_59 : f32 to vector<32x3xf32>
    %80 = arith.mulf %79, %76 : vector<32x3xf32>
    %81 = arith.select %78, %76, %80 : vector<32x3xi1>, vector<32x3xf32>
    %82 = vector.extract_strided_slice %81 {offsets = [0, 0], sizes = [32, 1], strides = [1, 1]} : vector<32x3xf32> to vector<32x1xf32>
    %cst_60 = arith.constant -1.000000e+30 : f32
    %83 = vector.shape_cast %82 : vector<32x1xf32> to vector<32x1xf32>
    %84 = vector.broadcast %83 : vector<32x1xf32> to vector<32x8xf32>
    %85 = vector.broadcast %cst_60 : f32 to vector<32x8xf32>
    %86 = arith.select %56, %84, %85 : vector<32x8xi1>, vector<32x8xf32>
    %cst_61 = arith.constant dense<0xFF800000> : vector<8xf32>
    %87 = vector.multi_reduction <maximumf>, %86, %cst_61 [0] : vector<32x8xf32> to vector<8xf32>
    %88 = vector.shape_cast %87 : vector<8xf32> to vector<1x8xf32>
    %cst_62 = arith.constant 0.000000e+00 : f32
    %89 = vector.shape_cast %88 : vector<1x8xf32> to vector<1x8xf32>
    %90 = vector.broadcast %89 : vector<1x8xf32> to vector<32x8xf32>
    %91 = vector.broadcast %cst_62 : f32 to vector<32x8xf32>
    %92 = arith.select %56, %90, %91 : vector<32x8xi1>, vector<32x8xf32>
    %cst_63 = arith.constant dense<0.000000e+00> : vector<32xf32>
    %93 = vector.multi_reduction <add>, %92, %cst_63 [1] : vector<32x8xf32> to vector<32xf32>
    %94 = vector.shape_cast %93 : vector<32xf32> to vector<32x1xf32>
    %95 = vector.extract_strided_slice %81 {offsets = [0, 1], sizes = [32, 1], strides = [1, 1]} : vector<32x3xf32> to vector<32x1xf32>
    %cst_64 = arith.constant -1.000000e+30 : f32
    %96 = vector.shape_cast %95 : vector<32x1xf32> to vector<32x1xf32>
    %97 = vector.broadcast %96 : vector<32x1xf32> to vector<32x8xf32>
    %98 = vector.broadcast %cst_64 : f32 to vector<32x8xf32>
    %99 = arith.select %56, %97, %98 : vector<32x8xi1>, vector<32x8xf32>
    %cst_65 = arith.constant dense<0xFF800000> : vector<8xf32>
    %100 = vector.multi_reduction <maximumf>, %99, %cst_65 [0] : vector<32x8xf32> to vector<8xf32>
    %101 = vector.shape_cast %100 : vector<8xf32> to vector<1x8xf32>
    %cst_66 = arith.constant 0.000000e+00 : f32
    %102 = vector.shape_cast %101 : vector<1x8xf32> to vector<1x8xf32>
    %103 = vector.broadcast %102 : vector<1x8xf32> to vector<32x8xf32>
    %104 = vector.broadcast %cst_66 : f32 to vector<32x8xf32>
    %105 = arith.select %56, %103, %104 : vector<32x8xi1>, vector<32x8xf32>
    %cst_67 = arith.constant dense<0.000000e+00> : vector<32xf32>
    %106 = vector.multi_reduction <add>, %105, %cst_67 [1] : vector<32x8xf32> to vector<32xf32>
    %107 = vector.shape_cast %106 : vector<32xf32> to vector<32x1xf32>
    %108 = vector.extract_strided_slice %81 {offsets = [0, 2], sizes = [32, 1], strides = [1, 1]} : vector<32x3xf32> to vector<32x1xf32>
    %cst_68 = arith.constant -1.000000e+30 : f32
    %109 = vector.shape_cast %108 : vector<32x1xf32> to vector<32x1xf32>
    %110 = vector.broadcast %109 : vector<32x1xf32> to vector<32x8xf32>
    %111 = vector.broadcast %cst_68 : f32 to vector<32x8xf32>
    %112 = arith.select %56, %110, %111 : vector<32x8xi1>, vector<32x8xf32>
    %cst_69 = arith.constant dense<0xFF800000> : vector<8xf32>
    %113 = vector.multi_reduction <maximumf>, %112, %cst_69 [0] : vector<32x8xf32> to vector<8xf32>
    %114 = vector.shape_cast %113 : vector<8xf32> to vector<1x8xf32>
    %cst_70 = arith.constant 0.000000e+00 : f32
    %115 = vector.shape_cast %114 : vector<1x8xf32> to vector<1x8xf32>
    %116 = vector.broadcast %115 : vector<1x8xf32> to vector<32x8xf32>
    %117 = vector.broadcast %cst_70 : f32 to vector<32x8xf32>
    %118 = arith.select %56, %116, %117 : vector<32x8xi1>, vector<32x8xf32>
    %cst_71 = arith.constant dense<0.000000e+00> : vector<32xf32>
    %119 = vector.multi_reduction <add>, %118, %cst_71 [1] : vector<32x8xf32> to vector<32xf32>
    %120 = vector.shape_cast %119 : vector<32xf32> to vector<32x1xf32>
    %121 = tpu.concatenate %94, %107, %120 in 1 : vector<32x1xf32>, vector<32x1xf32>, vector<32x1xf32> -> vector<32x3xf32>
    %122 = arith.subf %81, %121 : vector<32x3xf32>
    %123 = math.exp %122 : vector<32x3xf32>
    %124 = arith.truncf %123 : vector<32x3xf32> to vector<32x3xbf16>
    %cst_72 = arith.constant dense<0.000000e+00> : vector<8x3xf32>
    %125 = tpu.matmul %66, %124, %cst_72 {dimension_numbers = #tpu.dot_dimension_numbers<[1], [0], [0], [1], [0, 0, 1, 1], [], []>} : vector<8x32xbf16>, vector<32x3xbf16>, vector<8x3xf32> -> vector<8x3xf32>
    %126 = arith.truncf %125 : vector<8x3xf32> to vector<8x3xbf16>
    %cst_73 = arith.constant dense<0.000000e+00> : vector<32x3xf32>
    %127 = tpu.matmul %60, %126, %cst_73 {dimension_numbers = #tpu.dot_dimension_numbers<[1], [0], [0], [1], [0, 0, 1, 1], [], []>} : vector<32x8xbf16>, vector<8x3xbf16>, vector<32x3xf32> -> vector<32x3xf32>
    %cst_74 = arith.constant 0.000000e+00 : f32
    %128 = vector.broadcast %cst_74 : f32 to vector<32x3xf32>
    %129 = arith.cmpf ogt, %127, %128 : vector<32x3xf32>
    %130 = tpu.reciprocal %127 {approx = true} : vector<32x3xf32> -> vector<32x3xf32>
    %cst_75 = arith.constant 0.000000e+00 : f32
    %131 = vector.broadcast %cst_75 : f32 to vector<32x3xf32>
    %132 = arith.select %129, %130, %131 : vector<32x3xi1>, vector<32x3xf32>
    %133 = arith.mulf %123, %132 : vector<32x3xf32>
    %cst_76 = arith.constant dense<0.000000e+00> : vector<32xf32>
    %134 = vector.multi_reduction <add>, %133, %cst_76 [1] : vector<32x3xf32> to vector<32xf32>
    %135 = vector.shape_cast %134 : vector<32xf32> to vector<32x1xf32>
    %cst_77 = arith.constant 0.013888889 : f32
    %136 = vector.broadcast %cst_77 : f32 to vector<32x1xf32>
    %137 = arith.mulf %135, %136 : vector<32x1xf32>
    %138 = vector.broadcast %137 : vector<32x1xf32> to vector<32x128xf32>
    %139 = arith.mulf %38, %138 : vector<32x128xf32>
    %140 = arith.mulf %68, %139 : vector<32x128xf32>
    %141 = arith.truncf %140 : vector<32x128xf32> to vector<32x128xbf16>
    %142 = arith.mulf %69, %139 : vector<32x128xf32>
    %143 = arith.truncf %142 : vector<32x128xf32> to vector<32x128xbf16>
    %144 = tpu.concatenate %141, %143 in 1 : vector<32x128xbf16>, vector<32x128xbf16> -> vector<32x256xbf16>
    %cst_78 = arith.constant dense<0.000000e+00> : vector<8x256xf32>
    %145 = tpu.matmul %66, %144, %cst_78 {dimension_numbers = #tpu.dot_dimension_numbers<[1], [0], [0], [1], [0, 0, 1, 1], [], []>} : vector<8x32xbf16>, vector<32x256xbf16>, vector<8x256xf32> -> vector<8x256xf32>
    %146 = arith.truncf %145 : vector<8x256xf32> to vector<8x256xbf16>
    %cst_79 = arith.constant dense<0.000000e+00> : vector<8x128xf32>
    %147 = tpu.matmul %146, %29, %cst_79 {dimension_numbers = #tpu.dot_dimension_numbers<[1], [0], [0], [1], [0, 0, 1, 1], [], []>} : vector<8x256xbf16>, vector<256x128xbf16>, vector<8x128xf32> -> vector<8x128xf32>
    %148 = vector.broadcast %30 : vector<1x128xf32> to vector<8x128xf32>
    %149 = arith.addf %147, %148 : vector<8x128xf32>
    %cst_80 = arith.constant 0.000000e+00 : f32
    %150 = vector.broadcast %cst_80 : f32 to vector<8x128xf32>
    %151 = arith.maximumf %149, %150 : vector<8x128xf32>
    %152 = arith.mulf %151, %151 : vector<8x128xf32>
    %cst_81 = arith.constant dense<0.000000e+00> : vector<8xf32>
    %153 = vector.multi_reduction <add>, %152, %cst_81 [1] : vector<8x128xf32> to vector<8xf32>
    %154 = vector.shape_cast %153 : vector<8xf32> to vector<8x1xf32>
    %cst_82 = arith.constant 0.000000e+00 : f32
    %155 = vector.broadcast %cst_82 : f32 to vector<8x1xf32>
    %156 = arith.cmpf oeq, %154, %155 : vector<8x1xf32>
    %157 = math.rsqrt %154 : vector<8x1xf32>
    %cst_83 = arith.constant 1.000000e+00 : f32
    %158 = vector.broadcast %cst_83 : f32 to vector<8x1xf32>
    %159 = arith.select %156, %158, %157 : vector<8x1xi1>, vector<8x1xf32>
    %160 = vector.broadcast %159 : vector<8x1xf32> to vector<8x128xf32>
    %161 = arith.mulf %151, %160 : vector<8x128xf32>
    %c1_i32_84 = arith.constant 1 : i32
    %c1_i32_85 = arith.constant 1 : i32
    %c1_i32_86 = arith.constant 1 : i32
    %c0_i32_87 = arith.constant 0 : i32
    %c0_i32_88 = arith.constant 0 : i32
    %162 = tpu.memref_slice %arg1[%c1_i32_84, %c0_i32_87, %c0_i32_88] : memref<2x32x128xbf16, #tpu.memory_space<any>> -> memref<1x32x128xbf16, #tpu.memory_space<any>>
    %163 = tpu.memref_squeeze %162 : memref<1x32x128xbf16, #tpu.memory_space<any>> -> memref<32x128xbf16, #tpu.memory_space<any>>
    %c0_i32_89 = arith.constant 0 : i32
    %c0_i32_90 = arith.constant 0 : i32
    %164 = tpu.memref_slice %arg23[%c1_i32_85, %c0_i32_89, %c0_i32_90] : memref<2x32x128xbf16, #tpu.memory_space<vmem>> -> memref<1x32x128xbf16, #tpu.memory_space<vmem>>
    %165 = tpu.memref_squeeze %164 : memref<1x32x128xbf16, #tpu.memory_space<vmem>> -> memref<32x128xbf16, #tpu.memory_space<vmem>>
    %166 = tpu.memref_slice %arg24[%c1_i32_86] : memref<2x!tpu.dma_semaphore, #tpu.memory_space<semaphore_mem>> -> memref<1x!tpu.dma_semaphore, #tpu.memory_space<semaphore_mem>>
    %167 = tpu.memref_squeeze %166 : memref<1x!tpu.dma_semaphore, #tpu.memory_space<semaphore_mem>> -> memref<!tpu.dma_semaphore, #tpu.memory_space<semaphore_mem>>
    tpu.wait_dma2 semaphore(%167 : memref<!tpu.dma_semaphore, #tpu.memory_space<semaphore_mem>>) src(%163 : memref<32x128xbf16, #tpu.memory_space<any>>) dst(%165 : memref<32x128xbf16, #tpu.memory_space<vmem>>)
    %c1 = arith.constant 1 : index
    %c0_91 = arith.constant 0 : index
    %c0_92 = arith.constant 0 : index
    %168 = vector.load %arg23[%c1, %c0_91, %c0_92] : memref<2x32x128xbf16, #tpu.memory_space<vmem>>, vector<1x32x128xbf16>
    %169 = vector.shape_cast %168 : vector<1x32x128xbf16> to vector<32x128xbf16>
    %170 = vector.extract_strided_slice %169 {offsets = [0, 0], sizes = [16, 128], strides = [1, 1]} : vector<32x128xbf16> to vector<16x128xbf16>
    %c0_93 = arith.constant 0 : index
    %c0_94 = arith.constant 0 : index
    %171 = vector.load %arg12[%c0_93, %c0_94] : memref<16x1xi32, #tpu.memory_space<vmem>>, vector<16x1xi32>
    %c0_95 = arith.constant 0 : index
    %c0_96 = arith.constant 0 : index
    %172 = vector.load %arg13[%c0_95, %c0_96] : memref<16x1xi32, #tpu.memory_space<vmem>>, vector<16x1xi32>
    %c0_97 = arith.constant 0 : index
    %c0_98 = arith.constant 0 : index
    %173 = vector.load %arg14[%c0_97, %c0_98] : memref<1x16xi32, #tpu.memory_space<vmem>>, vector<1x16xi32>
    %c0_99 = arith.constant 0 : index
    %c0_100 = arith.constant 0 : index
    %174 = vector.load %arg15[%c0_99, %c0_100] : memref<128x128xbf16, #tpu.memory_space<vmem>>, vector<128x128xbf16>
    %c0_101 = arith.constant 0 : index
    %c0_102 = arith.constant 0 : index
    %175 = vector.load %arg16[%c0_101, %c0_102] : memref<1x128xf32, #tpu.memory_space<vmem>>, vector<1x128xf32>
    %c0_103 = arith.constant 0 : index
    %c0_104 = arith.constant 0 : index
    %176 = vector.load %arg17[%c0_103, %c0_104] : memref<128x3xbf16, #tpu.memory_space<vmem>>, vector<128x3xbf16>
    %c0_105 = arith.constant 0 : index
    %c0_106 = arith.constant 0 : index
    %177 = vector.load %arg18[%c0_105, %c0_106] : memref<128x3xbf16, #tpu.memory_space<vmem>>, vector<128x3xbf16>
    %c0_107 = arith.constant 0 : index
    %c0_108 = arith.constant 0 : index
    %178 = vector.load %arg19[%c0_107, %c0_108] : memref<128x3xbf16, #tpu.memory_space<vmem>>, vector<128x3xbf16>
    %c0_109 = arith.constant 0 : index
    %c0_110 = arith.constant 0 : index
    %179 = vector.load %arg20[%c0_109, %c0_110] : memref<256x128xbf16, #tpu.memory_space<vmem>>, vector<256x128xbf16>
    %c0_111 = arith.constant 0 : index
    %c0_112 = arith.constant 0 : index
    %180 = vector.load %arg21[%c0_111, %c0_112] : memref<1x128xf32, #tpu.memory_space<vmem>>, vector<1x128xf32>
    %181 = arith.truncf %161 : vector<8x128xf32> to vector<8x128xbf16>
    %cst_113 = arith.constant dense<0.000000e+00> : vector<8x128xf32>
    %182 = tpu.matmul %181, %174, %cst_113 {dimension_numbers = #tpu.dot_dimension_numbers<[1], [0], [0], [1], [0, 0, 1, 1], [], []>} : vector<8x128xbf16>, vector<128x128xbf16>, vector<8x128xf32> -> vector<8x128xf32>
    %183 = vector.broadcast %175 : vector<1x128xf32> to vector<8x128xf32>
    %184 = arith.addf %182, %183 : vector<8x128xf32>
    %cst_114 = arith.constant 0.000000e+00 : f32
    %185 = vector.broadcast %cst_114 : f32 to vector<8x128xf32>
    %186 = arith.maximumf %184, %185 : vector<8x128xf32>
    %187 = arith.extf %170 : vector<16x128xbf16> to vector<16x128xf32>
    %cst_115 = arith.constant 0.000000e+00 : f32
    %188 = vector.broadcast %cst_115 : f32 to vector<16x128xf32>
    %189 = arith.maximumf %187, %188 : vector<16x128xf32>
    %190 = arith.truncf %189 : vector<16x128xf32> to vector<16x128xbf16>
    %191 = tpu.iota {dimensions = array<i32: 1>} : vector<16x8xi32>
    %192 = tpu.iota {dimensions = array<i32: 1>} : vector<16x4xi32>
    %193 = tpu.iota {dimensions = array<i32: 0>} : vector<4x16xi32>
    %194 = vector.broadcast %171 : vector<16x1xi32> to vector<16x8xi32>
    %195 = arith.cmpi eq, %191, %194 : vector<16x8xi32>
    %cst_116 = arith.constant 1.000000e+00 : f32
    %cst_117 = arith.constant 0.000000e+00 : f32
    %196 = vector.broadcast %cst_116 : f32 to vector<16x8xf32>
    %197 = vector.broadcast %cst_117 : f32 to vector<16x8xf32>
    %198 = arith.select %195, %196, %197 : vector<16x8xi1>, vector<16x8xf32>
    %199 = arith.truncf %198 : vector<16x8xf32> to vector<16x8xbf16>
    %200 = vector.broadcast %172 : vector<16x1xi32> to vector<16x8xi32>
    %201 = arith.cmpi eq, %191, %200 : vector<16x8xi32>
    %cst_118 = arith.constant 1.000000e+00 : f32
    %cst_119 = arith.constant 0.000000e+00 : f32
    %202 = vector.broadcast %cst_118 : f32 to vector<16x8xf32>
    %203 = vector.broadcast %cst_119 : f32 to vector<16x8xf32>
    %204 = arith.select %201, %202, %203 : vector<16x8xi1>, vector<16x8xf32>
    %205 = arith.truncf %204 : vector<16x8xf32> to vector<16x8xbf16>
    %206 = vector.broadcast %172 : vector<16x1xi32> to vector<16x4xi32>
    %207 = arith.cmpi eq, %192, %206 : vector<16x4xi32>
    %cst_120 = arith.constant 1.000000e+00 : f32
    %cst_121 = arith.constant 0.000000e+00 : f32
    %208 = vector.broadcast %cst_120 : f32 to vector<16x4xf32>
    %209 = vector.broadcast %cst_121 : f32 to vector<16x4xf32>
    %210 = arith.select %207, %208, %209 : vector<16x4xi1>, vector<16x4xf32>
    %211 = arith.truncf %210 : vector<16x4xf32> to vector<16x4xbf16>
    %212 = vector.broadcast %173 : vector<1x16xi32> to vector<4x16xi32>
    %213 = arith.cmpi eq, %193, %212 : vector<4x16xi32>
    %cst_122 = arith.constant 1.000000e+00 : f32
    %cst_123 = arith.constant 0.000000e+00 : f32
    %214 = vector.broadcast %cst_122 : f32 to vector<4x16xf32>
    %215 = vector.broadcast %cst_123 : f32 to vector<4x16xf32>
    %216 = arith.select %213, %214, %215 : vector<4x16xi1>, vector<4x16xf32>
    %217 = arith.truncf %216 : vector<4x16xf32> to vector<4x16xbf16>
    %218 = arith.truncf %186 : vector<8x128xf32> to vector<8x128xbf16>
    %cst_124 = arith.constant dense<0.000000e+00> : vector<16x128xf32>
    %219 = tpu.matmul %199, %218, %cst_124 {dimension_numbers = #tpu.dot_dimension_numbers<[1], [0], [0], [1], [0, 0, 1, 1], [], []>} : vector<16x8xbf16>, vector<8x128xbf16>, vector<16x128xf32> -> vector<16x128xf32>
    %cst_125 = arith.constant dense<0.000000e+00> : vector<16x128xf32>
    %220 = tpu.matmul %205, %181, %cst_125 {dimension_numbers = #tpu.dot_dimension_numbers<[1], [0], [0], [1], [0, 0, 1, 1], [], []>} : vector<16x8xbf16>, vector<8x128xbf16>, vector<16x128xf32> -> vector<16x128xf32>
    %221 = arith.truncf %219 : vector<16x128xf32> to vector<16x128xbf16>
    %cst_126 = arith.constant dense<0.000000e+00> : vector<16x3xf32>
    %222 = tpu.matmul %221, %176, %cst_126 {dimension_numbers = #tpu.dot_dimension_numbers<[1], [0], [0], [1], [0, 0, 1, 1], [], []>} : vector<16x128xbf16>, vector<128x3xbf16>, vector<16x3xf32> -> vector<16x3xf32>
    %223 = arith.truncf %220 : vector<16x128xf32> to vector<16x128xbf16>
    %cst_127 = arith.constant dense<0.000000e+00> : vector<16x3xf32>
    %224 = tpu.matmul %223, %177, %cst_127 {dimension_numbers = #tpu.dot_dimension_numbers<[1], [0], [0], [1], [0, 0, 1, 1], [], []>} : vector<16x128xbf16>, vector<128x3xbf16>, vector<16x3xf32> -> vector<16x3xf32>
    %225 = arith.addf %222, %224 : vector<16x3xf32>
    %cst_128 = arith.constant dense<0.000000e+00> : vector<16x3xf32>
    %226 = tpu.matmul %190, %178, %cst_128 {dimension_numbers = #tpu.dot_dimension_numbers<[1], [0], [0], [1], [0, 0, 1, 1], [], []>} : vector<16x128xbf16>, vector<128x3xbf16>, vector<16x3xf32> -> vector<16x3xf32>
    %227 = arith.addf %225, %226 : vector<16x3xf32>
    %cst_129 = arith.constant 0.000000e+00 : f32
    %228 = vector.broadcast %cst_129 : f32 to vector<16x3xf32>
    %229 = arith.cmpf oge, %227, %228 : vector<16x3xf32>
    %cst_130 = arith.constant 0.00999999977 : f32
    %230 = vector.broadcast %cst_130 : f32 to vector<16x3xf32>
    %231 = arith.mulf %230, %227 : vector<16x3xf32>
    %232 = arith.select %229, %227, %231 : vector<16x3xi1>, vector<16x3xf32>
    %233 = vector.extract_strided_slice %232 {offsets = [0, 0], sizes = [16, 1], strides = [1, 1]} : vector<16x3xf32> to vector<16x1xf32>
    %cst_131 = arith.constant -1.000000e+30 : f32
    %234 = vector.shape_cast %233 : vector<16x1xf32> to vector<16x1xf32>
    %235 = vector.broadcast %234 : vector<16x1xf32> to vector<16x4xf32>
    %236 = vector.broadcast %cst_131 : f32 to vector<16x4xf32>
    %237 = arith.select %207, %235, %236 : vector<16x4xi1>, vector<16x4xf32>
    %cst_132 = arith.constant dense<0xFF800000> : vector<4xf32>
    %238 = vector.multi_reduction <maximumf>, %237, %cst_132 [0] : vector<16x4xf32> to vector<4xf32>
    %239 = vector.shape_cast %238 : vector<4xf32> to vector<1x4xf32>
    %cst_133 = arith.constant 0.000000e+00 : f32
    %240 = vector.shape_cast %239 : vector<1x4xf32> to vector<1x4xf32>
    %241 = vector.broadcast %240 : vector<1x4xf32> to vector<16x4xf32>
    %242 = vector.broadcast %cst_133 : f32 to vector<16x4xf32>
    %243 = arith.select %207, %241, %242 : vector<16x4xi1>, vector<16x4xf32>
    %cst_134 = arith.constant dense<0.000000e+00> : vector<16xf32>
    %244 = vector.multi_reduction <add>, %243, %cst_134 [1] : vector<16x4xf32> to vector<16xf32>
    %245 = vector.shape_cast %244 : vector<16xf32> to vector<16x1xf32>
    %246 = vector.extract_strided_slice %232 {offsets = [0, 1], sizes = [16, 1], strides = [1, 1]} : vector<16x3xf32> to vector<16x1xf32>
    %cst_135 = arith.constant -1.000000e+30 : f32
    %247 = vector.shape_cast %246 : vector<16x1xf32> to vector<16x1xf32>
    %248 = vector.broadcast %247 : vector<16x1xf32> to vector<16x4xf32>
    %249 = vector.broadcast %cst_135 : f32 to vector<16x4xf32>
    %250 = arith.select %207, %248, %249 : vector<16x4xi1>, vector<16x4xf32>
    %cst_136 = arith.constant dense<0xFF800000> : vector<4xf32>
    %251 = vector.multi_reduction <maximumf>, %250, %cst_136 [0] : vector<16x4xf32> to vector<4xf32>
    %252 = vector.shape_cast %251 : vector<4xf32> to vector<1x4xf32>
    %cst_137 = arith.constant 0.000000e+00 : f32
    %253 = vector.shape_cast %252 : vector<1x4xf32> to vector<1x4xf32>
    %254 = vector.broadcast %253 : vector<1x4xf32> to vector<16x4xf32>
    %255 = vector.broadcast %cst_137 : f32 to vector<16x4xf32>
    %256 = arith.select %207, %254, %255 : vector<16x4xi1>, vector<16x4xf32>
    %cst_138 = arith.constant dense<0.000000e+00> : vector<16xf32>
    %257 = vector.multi_reduction <add>, %256, %cst_138 [1] : vector<16x4xf32> to vector<16xf32>
    %258 = vector.shape_cast %257 : vector<16xf32> to vector<16x1xf32>
    %259 = vector.extract_strided_slice %232 {offsets = [0, 2], sizes = [16, 1], strides = [1, 1]} : vector<16x3xf32> to vector<16x1xf32>
    %cst_139 = arith.constant -1.000000e+30 : f32
    %260 = vector.shape_cast %259 : vector<16x1xf32> to vector<16x1xf32>
    %261 = vector.broadcast %260 : vector<16x1xf32> to vector<16x4xf32>
    %262 = vector.broadcast %cst_139 : f32 to vector<16x4xf32>
    %263 = arith.select %207, %261, %262 : vector<16x4xi1>, vector<16x4xf32>
    %cst_140 = arith.constant dense<0xFF800000> : vector<4xf32>
    %264 = vector.multi_reduction <maximumf>, %263, %cst_140 [0] : vector<16x4xf32> to vector<4xf32>
    %265 = vector.shape_cast %264 : vector<4xf32> to vector<1x4xf32>
    %cst_141 = arith.constant 0.000000e+00 : f32
    %266 = vector.shape_cast %265 : vector<1x4xf32> to vector<1x4xf32>
    %267 = vector.broadcast %266 : vector<1x4xf32> to vector<16x4xf32>
    %268 = vector.broadcast %cst_141 : f32 to vector<16x4xf32>
    %269 = arith.select %207, %267, %268 : vector<16x4xi1>, vector<16x4xf32>
    %cst_142 = arith.constant dense<0.000000e+00> : vector<16xf32>
    %270 = vector.multi_reduction <add>, %269, %cst_142 [1] : vector<16x4xf32> to vector<16xf32>
    %271 = vector.shape_cast %270 : vector<16xf32> to vector<16x1xf32>
    %272 = tpu.concatenate %245, %258, %271 in 1 : vector<16x1xf32>, vector<16x1xf32>, vector<16x1xf32> -> vector<16x3xf32>
    %273 = arith.subf %232, %272 : vector<16x3xf32>
    %274 = math.exp %273 : vector<16x3xf32>
    %275 = arith.truncf %274 : vector<16x3xf32> to vector<16x3xbf16>
    %cst_143 = arith.constant dense<0.000000e+00> : vector<4x3xf32>
    %276 = tpu.matmul %217, %275, %cst_143 {dimension_numbers = #tpu.dot_dimension_numbers<[1], [0], [0], [1], [0, 0, 1, 1], [], []>} : vector<4x16xbf16>, vector<16x3xbf16>, vector<4x3xf32> -> vector<4x3xf32>
    %277 = arith.truncf %276 : vector<4x3xf32> to vector<4x3xbf16>
    %cst_144 = arith.constant dense<0.000000e+00> : vector<16x3xf32>
    %278 = tpu.matmul %211, %277, %cst_144 {dimension_numbers = #tpu.dot_dimension_numbers<[1], [0], [0], [1], [0, 0, 1, 1], [], []>} : vector<16x4xbf16>, vector<4x3xbf16>, vector<16x3xf32> -> vector<16x3xf32>
    %cst_145 = arith.constant 0.000000e+00 : f32
    %279 = vector.broadcast %cst_145 : f32 to vector<16x3xf32>
    %280 = arith.cmpf ogt, %278, %279 : vector<16x3xf32>
    %281 = tpu.reciprocal %278 {approx = true} : vector<16x3xf32> -> vector<16x3xf32>
    %cst_146 = arith.constant 0.000000e+00 : f32
    %282 = vector.broadcast %cst_146 : f32 to vector<16x3xf32>
    %283 = arith.select %280, %281, %282 : vector<16x3xi1>, vector<16x3xf32>
    %284 = arith.mulf %274, %283 : vector<16x3xf32>
    %cst_147 = arith.constant dense<0.000000e+00> : vector<16xf32>
    %285 = vector.multi_reduction <add>, %284, %cst_147 [1] : vector<16x3xf32> to vector<16xf32>
    %286 = vector.shape_cast %285 : vector<16xf32> to vector<16x1xf32>
    %cst_148 = arith.constant 0.020833334 : f32
    %287 = vector.broadcast %cst_148 : f32 to vector<16x1xf32>
    %288 = arith.mulf %286, %287 : vector<16x1xf32>
    %289 = vector.broadcast %288 : vector<16x1xf32> to vector<16x128xf32>
    %290 = arith.mulf %189, %289 : vector<16x128xf32>
    %291 = arith.mulf %219, %290 : vector<16x128xf32>
    %292 = arith.truncf %291 : vector<16x128xf32> to vector<16x128xbf16>
    %293 = arith.mulf %220, %290 : vector<16x128xf32>
    %294 = arith.truncf %293 : vector<16x128xf32> to vector<16x128xbf16>
    %295 = tpu.concatenate %292, %294 in 1 : vector<16x128xbf16>, vector<16x128xbf16> -> vector<16x256xbf16>
    %cst_149 = arith.constant dense<0.000000e+00> : vector<4x256xf32>
    %296 = tpu.matmul %217, %295, %cst_149 {dimension_numbers = #tpu.dot_dimension_numbers<[1], [0], [0], [1], [0, 0, 1, 1], [], []>} : vector<4x16xbf16>, vector<16x256xbf16>, vector<4x256xf32> -> vector<4x256xf32>
    %297 = arith.truncf %296 : vector<4x256xf32> to vector<4x256xbf16>
    %cst_150 = arith.constant dense<0.000000e+00> : vector<4x128xf32>
    %298 = tpu.matmul %297, %179, %cst_150 {dimension_numbers = #tpu.dot_dimension_numbers<[1], [0], [0], [1], [0, 0, 1, 1], [], []>} : vector<4x256xbf16>, vector<256x128xbf16>, vector<4x128xf32> -> vector<4x128xf32>
    %299 = vector.broadcast %180 : vector<1x128xf32> to vector<4x128xf32>
    %300 = arith.addf %298, %299 : vector<4x128xf32>
    %cst_151 = arith.constant 0.000000e+00 : f32
    %301 = vector.broadcast %cst_151 : f32 to vector<4x128xf32>
    %302 = arith.maximumf %300, %301 : vector<4x128xf32>
    %303 = arith.mulf %302, %302 : vector<4x128xf32>
    %cst_152 = arith.constant dense<0.000000e+00> : vector<4xf32>
    %304 = vector.multi_reduction <add>, %303, %cst_152 [1] : vector<4x128xf32> to vector<4xf32>
    %305 = vector.shape_cast %304 : vector<4xf32> to vector<4x1xf32>
    %cst_153 = arith.constant 0.000000e+00 : f32
    %306 = vector.broadcast %cst_153 : f32 to vector<4x1xf32>
    %307 = arith.cmpf oeq, %305, %306 : vector<4x1xf32>
    %308 = math.rsqrt %305 : vector<4x1xf32>
    %cst_154 = arith.constant 1.000000e+00 : f32
    %309 = vector.broadcast %cst_154 : f32 to vector<4x1xf32>
    %310 = arith.select %307, %309, %308 : vector<4x1xi1>, vector<4x1xf32>
    %311 = vector.broadcast %310 : vector<4x1xf32> to vector<4x128xf32>
    %312 = arith.mulf %302, %311 : vector<4x128xf32>
    %c0_155 = arith.constant 0 : index
    %c0_156 = arith.constant 0 : index
    %313 = vector.load %arg22[%c0_155, %c0_156] : memref<4x128xf32, #tpu.memory_space<vmem>>, vector<4x128xf32>
    tpu.vector_store %arg22[%c0_155, %c0_156], %312 {strides = array<i32>} : memref<4x128xf32, #tpu.memory_space<vmem>>, vector<4x128xf32>,
    return
  }
}

</mosaic_0001>

<bundles_post_ra>
// kernel: tpu_custom_call.1
= control target key start
LH: loop header
LB: loop body
LE: loop exit
PB: predicated region body
PF: predicated region fallthrough
CT: control target
= control target key end

     0   :  { %s4037_s0 = inlined_call_operand.vmem [shape: bf16[12,128], index: 0, kind: input, shape index: {}]   ;;  %s4038_s1 = inlined_call_operand.vmem [shape: bf16[2,32,128], index: 1, kind: input, shape index: {}]   ;;  %s4039_s2 = inlined_call_operand.vmem [shape: s32[32,1], index: 2, kind: input, shape index: {}]   ;;  %s4040_s3 = inlined_call_operand.vmem [shape: s32[32,1], index: 3, kind: input, shape index: {}]   ;;  %s4041_s4 = inlined_call_operand.vmem [shape: s32[1,32], index: 4, kind: input, shape index: {}]   ;;  %s4042_s5 = inlined_call_operand.vmem [shape: bf16[128,128], index: 5, kind: input, shape index: {}]   ;;  %s4043_s6 = inlined_call_operand.vmem [shape: f32[1,128], index: 6, kind: input, shape index: {}]   ;;  %s4044_s7 = inlined_call_operand.vmem [shape: bf16[128,3], index: 7, kind: input, shape index: {}]   ;;  %s4045_s8 = inlined_call_operand.vmem [shape: bf16[128,3], index: 8, kind: input, shape index: {}]   ;;  %s4046_s9 = inlined_call_operand.vmem [shape: bf16[128,3], index: 9, kind: input, shape index: {}]   ;;  %s4047_s10 = inlined_call_operand.vmem [shape: bf16[256,128], index: 10, kind: input, shape index: {}]   ;;  %s4048_s11 = inlined_call_operand.vmem [shape: f32[1,128], index: 11, kind: input, shape index: {}]   ;;  %s4049_s12 = inlined_call_operand.vmem [shape: s32[16,1], index: 12, kind: input, shape index: {}]   ;;  %s4050_s13 = inlined_call_operand.vmem [shape: s32[16,1], index: 13, kind: input, shape index: {}]   ;;  %s4051_s14 = inlined_call_operand.vmem [shape: s32[1,16], index: 14, kind: input, shape index: {}]   ;;  %s4052_s15 = inlined_call_operand.vmem [shape: bf16[128,128], index: 15, kind: input, shape index: {}]   ;;  %s4053_s16 = inlined_call_operand.vmem [shape: f32[1,128], index: 16, kind: input, shape index: {}]   ;;  %s4054_s17 = inlined_call_operand.vmem [shape: bf16[128,3], index: 17, kind: input, shape index: {}]   ;;  %s4055_s18 = inlined_call_operand.vmem [shape: bf16[128,3], index: 18, kind: input, shape index: {}]   ;;  %s4056_s19 = inlined_call_operand.vmem [shape: bf16[128,3], index: 19, kind: input, shape index: {}]   ;;  %s4057_s20 = inlined_call_operand.vmem [shape: bf16[256,128], index: 20, kind: input, shape index: {}]   ;;  %s4058_s21 = inlined_call_operand.vmem [shape: f32[1,128], index: 21, kind: input, shape index: {}]   ;;  %s4059_s22 = inlined_call_operand.hbm [shape: f32[4,128], index: 22, kind: output, shape index: {}]  }
   0x1   :  { %4065 = sst [smem:[#allocation11_spill]] %s4037_s0 }
   0x2   :  { %4066 = sst [smem:[#allocation12_spill]] %s4038_s1 }
   0x3   :  { %4067 = sst [smem:[#allocation13_spill]] %s4039_s2 }
   0x4   :  { %4068 = sst [smem:[#allocation14_spill]] %s4040_s3 }
   0x5   :  { %4069 = sst [smem:[#allocation15_spill]] %s4041_s4 }
   0x6   :  { %4070 = sst [smem:[#allocation16_spill]] %s4042_s5 }
   0x7   :  { %4071 = sst [smem:[#allocation17_spill]] %s4043_s6 }
   0x8   :  { %27 = vsyncpa [#allocation5], 0  ;;  %s4072_s29 = sld [smem:[#allocation12_spill]] }
   0xe   :  { %v3238_v0 = vld [vmem:[%s4072_s29] sm:$0xff]  ;;  %v3243_v1 = vld [vmem:[%s4072_s29 + $0x8] sm:$0xff] }
   0xf   :  { %114 = vsyncadd [#allocation3], 256  ;;  %v3248_v2 = vld [vmem:[%s4072_s29 + $0x10] sm:$0xff] }
  0x10   :  { %161 = vsyncadd [#allocation3 + $0x1], 256  ;;  %s4073_s24 = sld [smem:[#allocation11_spill]] }
  0x16   :  { %v162_v3 = vld [vmem:[%s4073_s24] sm:$0xf]  ;;  %v163_v4 = vld [vmem:[%s4073_s24 + $0x4] sm:$0x3] }
  0x17   :  { %3108 = dma.done.wait [#allocation3], 256 }
  0x18   :  { %3109 = vsyncadd [#allocation3], 4294967040  ;;  %v3114_v5 = vmov 0.0   ;;  %vm3115_vm0 = vmmov 0   ;;  %v3116_v6 = vmov 0   ;;  %s4074_s27 = sld [smem:[#allocation16_spill]]  ;;  %v2456_v23 = vcombine.low %v162_v3, %v163_v4 }
  0x19   :  { %2712 = vmatprep.subr.bf16.mxu0 %v3114_v5  ;;  %2728 = vmatprep.mubr.msk.bf16.mxu0 %vm3115_vm0, %v3114_v5  ;;  %s4075_s23 = sld [smem:[#allocation13_spill]]  ;;  %s4076_s0 = sld [smem:[#allocation14_spill]]  ;;  %v390_v24 = vlaneseq  ;;  %vm446_vm3 = vcmask 97280   ;;  %vm453_vm8 = vcmask 1045504   ;;  %v2964_v56 = vld [vmem:[%s4045_s8] sm:$0xff]   ;;  %v2965_v63 = vld [vmem:[%s4045_s8 + $0x8] sm:$0xff]  }
  0x1a   :  { %2948 = vset.pattern.permute.xlu1 %v3116_v6  ;;  %2947 = vset.pattern.permute.xlu0 %v3116_v6  ;;  %v513_v55 = vsel %vm453_vm8, %v2456_v23, 0  ;;  %v2966_v3 = vld [vmem:[%s4045_s8 + $0x10] sm:$0xff]   ;;  %v2967_v4 = vld [vmem:[%s4045_s8 + $0x18] sm:$0xff]   ;;  %vm899_vm15 = vcmask 64512   ;;  %s4086_s5 = sld [smem:[#allocation15_spill]] }
  0x1b   :  { %v3318_v25 = vand.u32 127, %v390_v24 }
  0x1e   :  { %v2956_v7 = vld [vmem:[%s4074_s27] sm:$0xff]   ;;  %v2957_v8 = vld [vmem:[%s4074_s27 + $0x8] sm:$0xff]   ;;  %v2958_v9 = vld [vmem:[%s4074_s27 + $0x10] sm:$0xff]  }
  0x1f   :  { %2713 = vmatpush3.bf16.msra.mxu0 %v2956_v7  ;;  %v172_v10 = vld [vmem:[%s4075_s23 + $0x10] sm:$0xff]  ;;  %v170_v11 = vld [vmem:[%s4075_s23] sm:$0xff]  ;;  %v2959_v12 = vld [vmem:[%s4074_s27 + $0x18] sm:$0xff]  }
  0x20   :  { %2714 = vmatprep.subr.bf16.mxu0 %v3114_v5  ;;  %401 = vperm.xlu1 %2948, %v172_v10   ;;  %v173_v13 = vld [vmem:[%s4075_s23 + $0x18] sm:$0xff]  ;;  %v171_v14 = vld [vmem:[%s4075_s23 + $0x8] sm:$0xff]  ;;  %v2960_v15 = vld [vmem:[%s4074_s27 + $0x20] sm:$0xff]  }
  0x21   :  { %395 = vperm.xlu0 %2947, %v170_v11   ;;  %v175_v16 = vld [vmem:[%s4076_s0 + $0x8] sm:$0xff]  ;;  %v174_v17 = vld [vmem:[%s4076_s0] sm:$0xff]  ;;  %v177_v19 = vld [vmem:[%s4076_s0 + $0x18] sm:$0xff] }
  0x22   :  { %v2961_v18 = vld [vmem:[%s4074_s27 + $0x28] sm:$0xff]   ;;  %v176_v20 = vld [vmem:[%s4076_s0 + $0x10] sm:$0xff]  ;;  %v2963_v22 = vld [vmem:[%s4074_s27 + $0x38] sm:$0xff]   ;;  %s4077_s0 = sld [smem:[#allocation17_spill]] }
  0x23   :  { %2715 = vmatpush3.bf16.msra.mxu0 %v2957_v8  ;;  %v2962_v21 = vld [vmem:[%s4074_s27 + $0x30] sm:$0xff]   ;;  %v2968_v7 = vld [vmem:[%s4045_s8 + $0x20] sm:$0xff]   ;;  %v2969_v8 = vld [vmem:[%s4045_s8 + $0x28] sm:$0xff]  }
  0x24   :  { %2716 = vmatprep.subr.bf16.mxu0 %v3114_v5  ;;  %404 = vperm.xlu1 %2948, %v173_v13   ;;  %v2971_v10 = vld [vmem:[%s4045_s8 + $0x38] sm:$0xff]   ;;  %v2972_v11 = vld [vmem:[%s4044_s7] sm:$0xff]  }
  0x25   :  { %398 = vperm.xlu0 %2947, %v171_v14  }
  0x27   :  { %2717 = vmatpush3.bf16.msra.mxu0 %v2958_v9  ;;  %v2970_v9 = vld [vmem:[%s4045_s8 + $0x30] sm:$0xff]  }
  0x28   :  { %2718 = vmatprep.subr.bf16.mxu0 %v3114_v5  ;;  %420 = vperm.xlu1 %2948, %v175_v16   ;;  %v2455_v33 = vld [vmem:[%s4077_s0] ss:$0 sm:$0xff] }
  0x29   :  { %417 = vperm.xlu0 %2947, %v174_v17  }
  0x2b   :  { %2719 = vmatpush3.bf16.msra.mxu0 %v2959_v12 }
  0x2c   :  { %2720 = vmatprep.subr.bf16.mxu0 %v3114_v5  ;;  %426 = vperm.xlu1 %2948, %v177_v19  }
  0x2d   :  { %423 = vperm.xlu0 %2947, %v176_v20  }
  0x2f   :  { %2721 = vmatpush3.bf16.msra.mxu0 %v2960_v15 }
  0x30   :  { %2722 = vmatprep.subr.bf16.mxu0 %v3114_v5 }
  0x33   :  { %2723 = vmatpush3.bf16.msra.mxu0 %v2961_v18 }
  0x34   :  { %2724 = vmatprep.subr.bf16.mxu0 %v3114_v5 }
  0x37   :  { %2725 = vmatpush3.bf16.msra.mxu0 %v2962_v21 }
  0x38   :  { %2726 = vmatprep.subr.bf16.mxu0 %v3114_v5 }
  0x3b   :  { %2727 = vmatpush3.bf16.msra.mxu0 %v2963_v22 }
  0x3e   :  { %2729 = vmatmul.mubr.bf16.vlgmr.msra.gmra.mrb[0].mxu0 %v2456_v23 }
  0x3f   :  { %1234 = vmatprep.mubr.bf16.mxu0 %v3116_v6 }
  0x9f   :  { %v402_v31 = vpop.permute.xlu1 %401 }
  0xa0   :  { %v396_v26 = vpop.permute.xlu0 %395  ;;  %vm408_vm4 = vcmp.eq.s32.totalorder %v3318_v25, %v402_v31  ;;  %v2978_v31 = vld [vmem:[%s4044_s7 + $0x30] sm:$0xff]  }
  0xa1   :  { %vm406_vm1 = vcmp.eq.s32.totalorder %v3318_v25, %v396_v26  ;;  %v412_v47 = vsel %vm408_vm4, 1.0, %v3114_v5  ;;  %v2973_v26 = vld [vmem:[%s4044_s7 + $0x8] sm:$0xff]   ;;  %vm1051_vm4 = vcmask 261120  }
  0xa2   :  { %v410_v27 = vsel %vm406_vm1, 1.0, %v3114_v5  ;;  %vm1027_vm1 = vcmask 7168  }
  0xa3   :  { %v405_v32 = vpop.permute.xlu1 %404 }
  0xa4   :  { %v399_v28 = vpop.permute.xlu0 %398  ;;  %vm409_vm5 = vcmp.eq.s32.totalorder %v3318_v25, %v405_v32  ;;  %v380_v32 = vunpack.c.l.bf16 %v3238_v0 }
  0xa5   :  { %vm407_vm2 = vcmp.eq.s32.totalorder %v3318_v25, %v399_v28  ;;  %v413_v48 = vsel %vm409_vm5, 1.0, %v3114_v5  ;;  %v2975_v28 = vld [vmem:[%s4044_s7 + $0x18] sm:$0xff]   ;;  %vm1100_vm5 = vcmask 1043456  }
  0xa6   :  { %v411_v29 = vsel %vm407_vm2, 1.0, %v3114_v5  ;;  %v415_v54 = vpack.c.bf16 %v413_v48, %v412_v47  ;;  %v383_v47 = vunpack.c.h.bf16 %v3243_v1  ;;  %v2987_v48 = vld [vmem:[%s4046_s9 + $0x38] sm:$0xff]   ;;  %vm1032_vm2 = vcmask 15360  }
  0xa7   :  { %v414_v30 = vpack.c.bf16 %v411_v29, %v410_v27  ;;  %v421_v40 = vpop.permute.xlu1 %420  ;;  %v2974_v27 = vld [vmem:[%s4044_s7 + $0x10] sm:$0xff]   ;;  %v2976_v29 = vld [vmem:[%s4044_s7 + $0x20] sm:$0xff]  }
  0xa8   :  { %v418_v41 = vpop.permute.xlu0 %417  ;;  %vm3331_vm6 = vcmp.eq.s32.totalorder %v3318_v25, %v421_v40  ;;  %v2983_v40 = vld [vmem:[%s4046_s9 + $0x18] sm:$0xff]  }
  0xa9   :  { %2734 = vmatprep.mubr.msk.bf16.mxu1 %vm446_vm3, %v414_v30  ;;  %vm3336_vm7 = vcmp.eq.s32.totalorder %v3318_v25, %v418_v41  ;;  %v433_v51 = vsel %vm3331_vm6, 1.0, %v3114_v5  ;;  %v2977_v30 = vld [vmem:[%s4044_s7 + $0x28] sm:$0xff]   ;;  %v2984_v41 = vld [vmem:[%s4046_s9 + $0x20] sm:$0xff]  }
  0xaa   :  { %v432_v50 = vsel %vm3336_vm7, 1.0, %v3114_v5 }
  0xab   :  { %v427_v52 = vpop.permute.xlu1 %426  ;;  %v3351_v57 = vpack.c.bf16 %v433_v51, %v432_v50  ;;  %v3481_v50 = vmax.f32 %v383_v47, 0.0 }
  0xac   :  { %v424_v53 = vpop.permute.xlu0 %423  ;;  %vm3354_vm9 = vcmp.eq.s32.totalorder %v3318_v25, %v427_v52 }
  0xad   :  { %vm3359_vm10 = vcmp.eq.s32.totalorder %v3318_v25, %v424_v53  ;;  %v435_v60 = vsel %vm3354_vm9, 1.0, %v3114_v5 }
  0xae   :  { %v434_v61 = vsel %vm3359_vm10, 1.0, %v3114_v5 }
  0xaf   :  { %v3372_v62 = vpack.c.bf16 %v435_v60, %v434_v61 }
 0x111   :  { %v371_v34 = vpop.f32.mrb[0].mxu0 }
 0x112   :  { %v372_v35 = vadd.f32 %v2455_v33, %v371_v34  ;;  %v2730_v36 = vpop.f32.mrb[1].mxu0  ;;  %v2979_v34 = vld [vmem:[%s4044_s7 + $0x38] sm:$0xff]  }
 0x113   :  { %v374_v37 = vpop.f32.mrb[2].mxu0 }
 0x114   :  { %v375_v38 = vadd.f32 %v2455_v33, %v374_v37  ;;  %v2731_v39 = vpop.f32.mrb[3].mxu0  ;;  %v378_v42 = vmax.f32 %v372_v35, 0.0  ;;  %v381_v33 = vunpack.c.h.bf16 %v3238_v0  ;;  %v3447_v35 = vmax.f32 %v380_v32, 0.0  ;;  %v2980_v37 = vld [vmem:[%s4046_s9] sm:$0xff]   ;;  %v2981_v0 = vld [vmem:[%s4046_s9 + $0x8] sm:$0xff]  }
 0x115   :  { %v2982_v39 = vld [vmem:[%s4046_s9 + $0x10] sm:$0xff]  }
 0x116   :  { %v379_v43 = vmax.f32 %v375_v38, 0.0  ;;  %v3449_v36 = vmax.f32 %v381_v33, 0.0 }
 0x118   :  { %v445_v46 = vpack.c.bf16 %v379_v43, %v378_v42  ;;  %v388_v38 = vpack.c.bf16 %v3449_v36, %v3447_v35  ;;  %v2985_v42 = vld [vmem:[%s4046_s9 + $0x28] sm:$0xff]   ;;  %v2986_v43 = vld [vmem:[%s4046_s9 + $0x30] sm:$0xff]  }
 0x11a   :  { %2938 = vmatprep.subr.msk.bf16.mxu1 %vm453_vm8, %v445_v46  ;;  %v455_v49 = vsel %vm453_vm8, %v445_v46, 0  ;;  %v382_v46 = vunpack.c.l.bf16 %v3243_v1  ;;  %v3117_v1 = vmov 1  }
 0x11b   :  { %2733 = vmatpush3.bf16.msra.mxu1 %v455_v49  ;;  %2949 = vset.pattern.permute.xlu1 %v3117_v1 }
 0x11c   :  { %2939 = vmatprep.subr.msk.bf16.mxu1 %vm453_vm8, %v2456_v23  ;;  %v3479_v49 = vmax.f32 %v382_v46, 0.0  ;;  %vm1169_vm8 = vcmask 23552  }
 0x11e   :  { %2735 = vmatmul.mubr.msk.bf16.vlgmr.msra.gmra.mrb[0].mxu1 %vm446_vm3, %v415_v54  ;;  %v389_v51 = vpack.c.bf16 %v3481_v50, %v3479_v49 }
 0x11f   :  { %2740 = vmatprep.mubr.msk.bf16.mxu1 %vm446_vm3, %v3351_v57  ;;  %2739 = vmatpush3.bf16.msra.mxu1 %v513_v55 }
 0x120   :  { %2744 = vmatprep.subr.bf16.mxu1 %v2964_v56 }
 0x126   :  { %2741 = vmatmul.mubr.msk.bf16.vlgmr.msra.gmra.mrb[4].mxu1 %vm446_vm3, %v3372_v62 }
 0x127   :  { %2745 = vmatpush3.bf16.msra.mxu1 %v2964_v56 }
 0x128   :  { %2746 = vmatprep.subr.bf16.mxu1 %v2965_v63 }
 0x12b   :  { %2747 = vmatpush3.bf16.msra.mxu1 %v2965_v63 }
 0x12c   :  { %2748 = vmatprep.subr.bf16.mxu1 %v2966_v3 }
 0x12f   :  { %2749 = vmatpush3.bf16.msra.mxu1 %v2966_v3  ;;  %v3118_v3 = vmov 2  }
 0x130   :  { %2750 = vmatprep.subr.bf16.mxu1 %v2967_v4 }
 0x133   :  { %2751 = vmatpush3.bf16.msra.mxu1 %v2967_v4 }
 0x134   :  { %2752 = vmatprep.subr.bf16.mxu1 %v2968_v7 }
 0x137   :  { %2753 = vmatpush3.bf16.msra.mxu1 %v2968_v7 }
 0x138   :  { %2754 = vmatprep.subr.bf16.mxu1 %v2969_v8 }
 0x13b   :  { %2755 = vmatpush3.bf16.msra.mxu1 %v2969_v8 }
 0x13c   :  { %2756 = vmatprep.subr.bf16.mxu1 %v2970_v9 }
 0x13f   :  { %2757 = vmatpush3.bf16.msra.mxu1 %v2970_v9 }
 0x140   :  { %2758 = vmatprep.subr.bf16.mxu1 %v2971_v10 }
 0x143   :  { %2759 = vmatpush3.bf16.msra.mxu1 %v2971_v10 }
 0x144   :  { %2764 = vmatprep.subr.bf16.mxu1 %v2972_v11 }
 0x1f1   :  { %v3400_v12 = vpop.f32.mrb[0].mxu1 }
 0x1f2   :  { %v3402_v13 = vpop.f32.mrb[1].mxu1 }
 0x1f3   :  { %v3404_v14 = vpop.f32.mrb[2].mxu1 }
 0x1f4   :  { %v565_v15 = vpack.c.bf16 %v3404_v14, %v3400_v12  ;;  %v3408_v16 = vpop.f32.mrb[3].mxu1 }
 0x1f5   :  { %v564_v17 = vpack.c.bf16 %v3408_v16, %v3402_v13 }
 0x1f9   :  { %v3412_v18 = vpop.f32.mrb[4].mxu1 }
 0x1fa   :  { %v3414_v19 = vpop.f32.mrb[5].mxu1 }
 0x1fb   :  { %v3416_v20 = vpop.f32.mrb[6].mxu1 }
 0x1fc   :  { %v567_v21 = vpack.c.bf16 %v3416_v20, %v3412_v18  ;;  %v3420_v22 = vpop.f32.mrb[7].mxu1 }
 0x1fd   :  { %v566_v23 = vpack.c.bf16 %v3420_v22, %v3414_v19 }
 0x1ff   :  { %2760 = vmatprep.mubr.bf16.mxu1 %v566_v23 }
 0x200   :  { %2761 = vmatmul.mubr.bf16.vlgmr.msra.gmra.mrb[8].mxu1 %v567_v21 }
 0x201   :  { %2765 = vmatpush3.bf16.msra.mxu1 %v2972_v11  ;;  %2780 = vmatprep.mubr.bf16.mxu1 %v564_v17 }
 0x202   :  { %2766 = vmatprep.subr.bf16.mxu1 %v2973_v26 }
 0x205   :  { %2767 = vmatpush3.bf16.msra.mxu1 %v2973_v26 }
 0x206   :  { %2768 = vmatprep.subr.bf16.mxu1 %v2974_v27 }
 0x209   :  { %2769 = vmatpush3.bf16.msra.mxu1 %v2974_v27 }
 0x20a   :  { %2770 = vmatprep.subr.bf16.mxu1 %v2975_v28 }
 0x20d   :  { %2771 = vmatpush3.bf16.msra.mxu1 %v2975_v28 }
 0x20e   :  { %2772 = vmatprep.subr.bf16.mxu1 %v2976_v29 }
 0x211   :  { %2773 = vmatpush3.bf16.msra.mxu1 %v2976_v29 }
 0x212   :  { %2774 = vmatprep.subr.bf16.mxu1 %v2977_v30 }
 0x215   :  { %2775 = vmatpush3.bf16.msra.mxu1 %v2977_v30 }
 0x216   :  { %2776 = vmatprep.subr.bf16.mxu1 %v2978_v31 }
 0x219   :  { %2777 = vmatpush3.bf16.msra.mxu1 %v2978_v31 }
 0x21a   :  { %2778 = vmatprep.subr.bf16.mxu1 %v2979_v34 }
 0x21d   :  { %2779 = vmatpush3.bf16.msra.mxu1 %v2979_v34 }
 0x21e   :  { %2784 = vmatprep.subr.bf16.mxu1 %v2980_v37 }
 0x220   :  { %2781 = vmatmul.mubr.bf16.vlgmr.msra.gmra.mrb[8].mxu1 %v565_v15 }
 0x221   :  { %2785 = vmatpush3.bf16.msra.mxu1 %v2980_v37  ;;  %2800 = vmatprep.mubr.bf16.mxu1 %v388_v38 }
 0x222   :  { %2786 = vmatprep.subr.bf16.mxu1 %v2981_v0 }
 0x225   :  { %2787 = vmatpush3.bf16.msra.mxu1 %v2981_v0 }
 0x226   :  { %2788 = vmatprep.subr.bf16.mxu1 %v2982_v39 }
 0x229   :  { %2789 = vmatpush3.bf16.msra.mxu1 %v2982_v39 }
 0x22a   :  { %2790 = vmatprep.subr.bf16.mxu1 %v2983_v40 }
 0x22d   :  { %2791 = vmatpush3.bf16.msra.mxu1 %v2983_v40 }
 0x22e   :  { %2792 = vmatprep.subr.bf16.mxu1 %v2984_v41 }
 0x231   :  { %2793 = vmatpush3.bf16.msra.mxu1 %v2984_v41 }
 0x232   :  { %2794 = vmatprep.subr.bf16.mxu1 %v2985_v42 }
 0x235   :  { %2795 = vmatpush3.bf16.msra.mxu1 %v2985_v42 }
 0x236   :  { %2796 = vmatprep.subr.bf16.mxu1 %v2986_v43 }
 0x239   :  { %2797 = vmatpush3.bf16.msra.mxu1 %v2986_v43 }
 0x23a   :  { %2798 = vmatprep.subr.bf16.mxu1 %v2987_v48 }
 0x23d   :  { %2799 = vmatpush3.bf16.msra.mxu1 %v2987_v48 }
 0x23e   :  { %2804 = vmatprep.subr.bf16.mxu1 %v3114_v5 }
 0x240   :  { %2801 = vmatmul.mubr.bf16.vlgmr.msra.gmra.mrb[8].mxu1 %v389_v51 }
 0x241   :  { %2808 = vmatprep.mubr.msk.bf16.mxu1 %vm3115_vm0, %v3114_v5 }
 0x313   :  { %v2802_v52 = vpop.f32.mrb[8].mxu1 }
 0x314   :  { %vm865_vm11 = vcmp.ge.f32.partialorder %v2802_v52, 0.0  ;;  %v869_v53 = vmul.f32 0.01, %v2802_v52  ;;  %v844_v54 = vpop.f32.mrb[9].mxu1 }
 0x315   :  { %v2803_v55 = vpop.f32.mrb[10].mxu1  ;;  %v867_v56 = vmul.f32 0.01, %v844_v54  ;;  %vm863_vm12 = vcmp.ge.f32.partialorder %v844_v54, 0.0 }
 0x316   :  { %v847_v60 = vpop.f32.mrb[11].mxu1  ;;  %v3489_v61 = vsel %vm865_vm11, %v2802_v52, %v869_v53  ;;  %v870_v4 = vmul.f32 0.01, %v2803_v55  ;;  %vm866_vm13 = vcmp.ge.f32.partialorder %v2803_v55, 0.0 }
 0x317   :  { %938 = vperm.xlu1 %2949, %v3489_v61   ;;  %887 = vperm.xlu0 %2947, %v3489_v61   ;;  %v3493_v63 = vsel %vm863_vm12, %v844_v54, %v867_v56  ;;  %v868_v7 = vmul.f32 0.01, %v847_v60  ;;  %vm864_vm14 = vcmp.ge.f32.partialorder %v847_v60, 0.0 }
 0x318   :  { %v3501_v8 = vsel %vm866_vm13, %v2803_v55, %v870_v4 }
 0x319   :  { %v3505_v9 = vsel %vm864_vm14, %v847_v60, %v868_v7 }
 0x31b   :  { %2951 = vset.pattern.permute.xlu1 %v3118_v3  ;;  %877 = vperm.xlu0 %2947, %v3493_v63  }
 0x31c   :  { %979 = vperm.xlu1 %2951, %v3493_v63  }
 0x31f   :  { %2950 = vset.pattern.permute.xlu0 %v3117_v1 }
 0x320   :  { %2952 = vset.pattern.permute.xlu1 %v3116_v6  ;;  %930 = vperm.xlu0 %2950, %v3493_v63  }
 0x321   :  { %892 = vperm.xlu1 %2952, %v3501_v8  }
 0x324   :  { %942 = vperm.xlu0 %2950, %v3501_v8  }
 0x325   :  { %882 = vperm.xlu1 %2952, %v3505_v9  }
 0x328   :  { %2954 = vset.pattern.permute.xlu0 %v3118_v3 }
 0x329   :  { %983 = vperm.xlu0 %2954, %v3505_v9   ;;  %2953 = vset.pattern.permute.xlu1 %v3117_v1 }
 0x32a   :  { %934 = vperm.xlu1 %2953, %v3505_v9  }
 0x32e   :  { %2955 = vset.pattern.permute.xlu1 %v3118_v3 }
 0x32f   :  { %987 = vperm.xlu1 %2955, %v3489_v61  }
 0x333   :  { %991 = vperm.xlu1 %2955, %v3501_v8  }
 0x396   :  { %v939_v10 = vpop.permute.xlu1 %938  ;;  %v888_v11 = vpop.permute.xlu0 %887 }
 0x397   :  { %v897_v27 = vsel %vm3359_vm10, %v888_v11, -1e+30  ;;  %v947_v40 = vsel %vm3359_vm10, %v939_v10, -1e+30 }
 0x398   :  { %v902_v33 = vsel %vm899_vm15, %v897_v27, -inf  ;;  %v951_v48 = vsel %vm899_vm15, %v947_v40, -inf }
 0x39a   :  { %v878_v15 = vpop.permute.xlu0 %877 }
 0x39b   :  { %v980_v17 = vpop.permute.xlu1 %979  ;;  %v895_v28 = vsel %vm3336_vm7, %v878_v15, -1e+30 }
 0x39c   :  { %v900_v34 = vsel %vm899_vm15, %v895_v28, -inf }
 0x39f   :  { %v931_v21 = vpop.permute.xlu0 %930 }
 0x3a0   :  { %v893_v23 = vpop.permute.xlu1 %892  ;;  %v945_v41 = vsel %vm3336_vm7, %v931_v21, -1e+30  ;;  %v994_v21 = vsel %vm3336_vm7, %v980_v17, -1e+30 }
 0x3a1   :  { %v898_v26 = vsel %vm3354_vm9, %v893_v23, -1e+30  ;;  %v949_v51 = vsel %vm899_vm15, %v945_v41, -inf }
 0x3a2   :  { %v903_v30 = vsel %vm899_vm15, %v898_v26, -inf }
 0x3a3   :  { %v943_v29 = vpop.permute.xlu0 %942  ;;  %v905_v0 = vmax.f32 %v902_v33, %v903_v30 }
 0x3a4   :  { %v883_v31 = vpop.permute.xlu1 %882  ;;  %v948_v37 = vsel %vm3354_vm9, %v943_v29, -1e+30 }
 0x3a5   :  { %v896_v32 = vsel %vm3331_vm6, %v883_v31, -1e+30  ;;  %v952_v42 = vsel %vm899_vm15, %v948_v37, -inf }
 0x3a6   :  { %v901_v38 = vsel %vm899_vm15, %v896_v32, -inf  ;;  %v954_v54 = vmax.f32 %v951_v48, %v952_v42  ;;  %v998_v32 = vsel %vm899_vm15, %v994_v21, -inf }
 0x3a7   :  { %v904_v39 = vmax.f32 %v900_v34, %v901_v38 }
 0x3a8   :  { %v984_v55 = vpop.permute.xlu0 %983 }
 0x3a9   :  { %v906_v43 = vmax.f32 %v904_v39, %v905_v0  ;;  %v935_v46 = vpop.permute.xlu1 %934  ;;  %v995_v11 = vsel %vm3331_vm6, %v984_v55, -1e+30 }
 0x3aa   :  { %v946_v47 = vsel %vm3331_vm6, %v935_v46, -1e+30  ;;  %v999_v27 = vsel %vm899_vm15, %v995_v11, -inf }
 0x3ab   :  { %v907_v52 = vrot.slane %v906_v43, 4  ;;  %v950_v53 = vsel %vm899_vm15, %v946_v47, -inf  ;;  %v1002_v17 = vmax.f32 %v998_v32, %v999_v27 }
 0x3ac   :  { %v953_v56 = vmax.f32 %v949_v51, %v950_v53 }
 0x3ad   :  { %v908_v60 = vmax.f32 %v906_v43, %v907_v52 }
 0x3ae   :  { %v955_v4 = vmax.f32 %v953_v56, %v954_v54  ;;  %v988_v7 = vpop.permute.xlu1 %987 }
 0x3af   :  { %v909_v10 = vrot.slane %v908_v60, 2  ;;  %v996_v26 = vsel %vm3359_vm10, %v988_v7, -1e+30 }
 0x3b0   :  { %v956_v15 = vrot.slane %v955_v4, 4  ;;  %v1000_v34 = vsel %vm899_vm15, %v996_v26, -inf }
 0x3b1   :  { %v910_v23 = vmax.f32 %v908_v60, %v909_v10 }
 0x3b2   :  { %v957_v28 = vmax.f32 %v955_v4, %v956_v15  ;;  %v992_v29 = vpop.permute.xlu1 %991 }
 0x3b3   :  { %v911_v30 = vrot.slane %v910_v23, 1  ;;  %v997_v31 = vsel %vm3354_vm9, %v992_v29, -1e+30 }
 0x3b4   :  { %v958_v33 = vrot.slane %v957_v28, 2  ;;  %v1001_v37 = vsel %vm899_vm15, %v997_v31, -inf }
 0x3b5   :  { %v1003_v38 = vmax.f32 %v1000_v34, %v1001_v37  ;;  %v912_v0 = vmax.f32 %v910_v23, %v911_v30 }
 0x3b6   :  { %v959_v39 = vmax.f32 %v957_v28, %v958_v33 }
 0x3b7   :  { %v1004_v40 = vmax.f32 %v1002_v17, %v1003_v38  ;;  %v914_v41 = vsel %vm3331_vm6, %v912_v0, 0.0  ;;  %v913_v42 = vsel %vm3336_vm7, %v912_v0, 0.0  ;;  %v916_v26 = vsel %vm3354_vm9, %v912_v0, 0.0 }
 0x3b8   :  { %v960_v43 = vrot.slane %v959_v39, 1  ;;  %v920_v46 = vsel %vm899_vm15, %v914_v41, 0.0  ;;  %v917_v47 = vsel %vm899_vm15, %v913_v42, 0.0  ;;  %v915_v27 = vsel %vm3359_vm10, %v912_v0, 0.0 }
 0x3b9   :  { %v1005_v48 = vrot.slane %v1004_v40, 4  ;;  %921 = vadd.xlane.f32.xlu1 %v920_v46  ;;  %918 = vadd.xlane.f32.xlu0 %v917_v47  ;;  %v926_v28 = vsel %vm899_vm15, %v916_v26, 0.0  ;;  %v923_v44 = vsel %vm899_vm15, %v915_v27, 0.0 }
 0x3ba   :  { %v961_v51 = vmax.f32 %v959_v39, %v960_v43 }
 0x3bb   :  { %v1006_v52 = vmax.f32 %v1004_v40, %v1005_v48 }
 0x3bc   :  { %v962_v53 = vsel %vm3336_vm7, %v961_v51, 0.0  ;;  %v963_v56 = vsel %vm3331_vm6, %v961_v51, 0.0  ;;  %v965_v45 = vsel %vm3354_vm9, %v961_v51, 0.0  ;;  %v964_v29 = vsel %vm3359_vm10, %v961_v51, 0.0 }
 0x3bd   :  { %v1007_v54 = vrot.slane %v1006_v52, 2  ;;  %v966_v55 = vsel %vm899_vm15, %v962_v53, 0.0  ;;  %v969_v7 = vsel %vm899_vm15, %v963_v56, 0.0  ;;  %v975_v30 = vsel %vm899_vm15, %v965_v45, 0.0 }
 0x3be   :  { %967 = vadd.xlane.f32.xlu0 %v966_v55  ;;  %v972_v31 = vsel %vm899_vm15, %v964_v29, 0.0 }
 0x3bf   :  { %v1008_v60 = vmax.f32 %v1006_v52, %v1007_v54 }
 0x3c1   :  { %v1009_v4 = vrot.slane %v1008_v60, 1 }
 0x3c2   :  { %970 = vadd.xlane.f32.xlu0 %v969_v7 }
 0x3c3   :  { %v1010_v10 = vmax.f32 %v1008_v60, %v1009_v4 }
 0x3c5   :  { %v1012_v11 = vsel %vm3331_vm6, %v1010_v10, 0.0  ;;  %v1011_v15 = vsel %vm3336_vm7, %v1010_v10, 0.0  ;;  %v1014_v32 = vsel %vm3354_vm9, %v1010_v10, 0.0  ;;  %v1013_v33 = vsel %vm3359_vm10, %v1010_v10, 0.0 }
 0x3c6   :  { %v1018_v21 = vsel %vm899_vm15, %v1012_v11, 0.0  ;;  %v1015_v23 = vsel %vm899_vm15, %v1011_v15, 0.0  ;;  %v1024_v34 = vsel %vm899_vm15, %v1014_v32, 0.0  ;;  %v1021_v37 = vsel %vm899_vm15, %v1013_v33, 0.0 }
 0x3c7   :  { %1019 = vadd.xlane.f32.xlu0 %v1018_v21  ;;  %1016 = vadd.xlane.f32.xlu1 %v1015_v23 }
 0x3cb   :  { %927 = vadd.xlane.f32.xlu0 %v926_v28  ;;  %924 = vadd.xlane.f32.xlu1 %v923_v44  ;;  %v3601_v28 = vshrl.u32 %v390_v24, 7  ;;  %v2465_v44 = vld [vmem:[%s4086_s5] ss:$0 sm:$0xff] }
 0x3cd   :  { %vm442_vm3 = vcmp.eq.s32.totalorder %v3601_v28, %v2465_v44 }
 0x3cf   :  { %976 = vadd.xlane.f32.xlu0 %v975_v30  ;;  %973 = vadd.xlane.f32.xlu1 %v972_v31 }
 0x3d3   :  { %1025 = vadd.xlane.f32.xlu0 %v1024_v34  ;;  %1022 = vadd.xlane.f32.xlu1 %v1021_v37 }
 0x446   :  { %v919_v17 = vpop.xlane.xlu0 %918  ;;  %v922_v39 = vpop.xlane.xlu1 %921 }
 0x44b   :  { %v968_v38 = vpop.xlane.xlu0 %967 }
 0x44c   :  { %v1028_v40 = vsel %vm1027_vm1, %v919_v17, %v968_v38 }
 0x44f   :  { %v971_v0 = vpop.xlane.xlu0 %970 }
 0x450   :  { %v1029_v58 = vsel %vm1027_vm1, %v922_v39, %v971_v0 }
 0x454   :  { %v1020_v41 = vpop.xlane.xlu0 %1019  ;;  %v1017_v42 = vpop.xlane.xlu1 %1016 }
 0x455   :  { %v1034_v59 = vsel %vm1032_vm2, %v1029_v58, %v1020_v41  ;;  %v1033_v43 = vsel %vm1032_vm2, %v1028_v40, %v1017_v42 }
 0x456   :  { %v1038_v46 = vsub.f32 %v3505_v9, %v1034_v59  ;;  %v1037_v47 = vsub.f32 %v3493_v63, %v1033_v43 }
 0x458   :  { %v1043_v48 = vmul.f32 1.442695, %v1038_v46  ;;  %v1041_v51 = vmul.f32 1.442695, %v1037_v47  ;;  %v928_v52 = vpop.xlane.xlu0 %927  ;;  %v925_v53 = vpop.xlane.xlu1 %924 }
 0x45a   :  { %3004 = vpow2.f32 %v1043_v48 }
 0x45b   :  { %3006 = vpow2.f32 %v1041_v51 }
 0x45c   :  { %v977_v54 = vpop.xlane.xlu0 %976  ;;  %v974_v55 = vpop.xlane.xlu1 %973 }
 0x45d   :  { %v1031_v56 = vsel %vm1027_vm1, %v928_v52, %v977_v54  ;;  %v1030_v60 = vsel %vm1027_vm1, %v925_v53, %v974_v55 }
 0x460   :  { %v1026_v4 = vpop.xlane.xlu0 %1025  ;;  %v1023_v7 = vpop.xlane.xlu1 %1022 }
 0x461   :  { %v1036_v10 = vsel %vm1032_vm2, %v1031_v56, %v1026_v4  ;;  %v1035_v9 = vsel %vm1032_vm2, %v1030_v60, %v1023_v7 }
 0x462   :  { %v1040_v63 = vsub.f32 %v3501_v8, %v1036_v10  ;;  %v1039_v11 = vsub.f32 %v3489_v61, %v1035_v9  ;;  %v443_v8 = vsel %vm442_vm3, 1.0, %v3114_v5 }
 0x463   :  { %v3608_v30 = vpack.c.bf16 %v443_v8, %v443_v8 }
 0x464   :  { %v3005_v15 = vpop.eup %3004  ;;  %v1047_v21 = vmul.f32 1.442695, %v1040_v63  ;;  %v1045_v23 = vmul.f32 1.442695, %v1039_v11 }
 0x465   :  { %v3007_v26 = vpop.eup %3006 }
 0x466   :  { %3008 = vpow2.f32 %v1047_v21  ;;  %v1049_v27 = vpack.c.bf16 %v3005_v15, %v3007_v26 }
 0x467   :  { %3010 = vpow2.f32 %v1045_v23 }
 0x468   :  { %2805 = vmatpush3.bf16.msra.mxu1 %v1049_v27 }
 0x469   :  { %2806 = vmatprep.subr.bf16.mxu1 %v3114_v5 }
 0x470   :  { %v3009_v61 = vpop.eup %3008 }
 0x471   :  { %v3011_v45 = vpop.eup %3010 }
 0x472   :  { %v1050_v29 = vpack.c.bf16 %v3009_v61, %v3011_v45 }
 0x474   :  { %2807 = vmatpush3.bf16.msra.mxu1 %v1050_v29 }
 0x477   :  { %2809 = vmatmul.mubr.msk.bf16.vlgmr.msra.gmra.mrb[12].mxu1 %vm1051_vm4, %v3608_v30 }
 0x478   :  { %2814 = vmatprep.mubr.msk.bf16.mxu1 %vm899_vm15, %v3351_v57 }
 0x54a   :  { %v1089_v24 = vpop.f32.mrb[12].mxu1 }
 0x54b   :  { %v1095_v31 = vpack.c.bf16 %v1089_v24, %v1089_v24  ;;  %v2810_v32 = vpop.f32.mrb[13].mxu1 }
 0x54c   :  { %v1092_v33 = vpop.f32.mrb[14].mxu1  ;;  %v2997_v32 = vld [vmem:[%s4047_s10 + $0x20] sm:$0xff]  }
 0x54d   :  { %v1102_v34 = vsel %vm1100_vm5, %v1095_v31, 0  ;;  %v2811_v37 = vpop.f32.mrb[15].mxu1  ;;  %2940 = vmatprep.subr.msk.bf16.mxu1 %vm1100_vm5, %v1095_v31  ;;  %v2996_v31 = vld [vmem:[%s4047_s10 + $0x60] sm:$0xff]   ;;  %v2998_v33 = vld [vmem:[%s4047_s10 + $0x68] sm:$0xff]  }
 0x54e   :  { %2813 = vmatpush3.bf16.msra.mxu1 %v1102_v34  ;;  %v2999_v34 = vld [vmem:[%s4047_s10 + $0x28] sm:$0xff]   ;;  %v3000_v37 = vld [vmem:[%s4047_s10 + $0x70] sm:$0xff]  }
 0x551   :  { %2815 = vmatmul.mubr.msk.bf16.vlgmr.msra.gmra.mrb[16].mxu1 %vm899_vm15, %v3372_v62 }
 0x624   :  { %v2816_v17 = vpop.f32.mrb[16].mxu1 }
 0x625   :  { %3012 = vrcp.f32 %v2816_v17  ;;  %v1138_v38 = vpop.f32.mrb[17].mxu1  ;;  %vm1155_vm6 = vcmp.gt.f32.partialorder %v2816_v17, 0.0  ;;  %v3001_v17 = vld [vmem:[%s4047_s10 + $0x30] sm:$0xff]  }
 0x626   :  { %3014 = vrcp.f32 %v1138_v38  ;;  %v2817_v0 = vpop.f32.mrb[18].mxu1  ;;  %vm1153_vm7 = vcmp.gt.f32.partialorder %v1138_v38, 0.0  ;;  %v3002_v38 = vld [vmem:[%s4047_s10 + $0x78] sm:$0xff]  }
 0x627   :  { %3016 = vrcp.f32 %v2817_v0  ;;  %v1141_v57 = vpop.f32.mrb[19].mxu1  ;;  %vm1156_vm9 = vcmp.gt.f32.partialorder %v2817_v0, 0.0  ;;  %v3003_v0 = vld [vmem:[%s4047_s10 + $0x38] sm:$0xff]  }
 0x628   :  { %3018 = vrcp.f32 %v1141_v57  ;;  %vm1154_vm10 = vcmp.gt.f32.partialorder %v1141_v57, 0.0 }
 0x62f   :  { %v3013_v39 = vpop.eup %3012 }
 0x630   :  { %v3015_v40 = vpop.eup %3014  ;;  %v1163_v41 = vsel %vm1155_vm6, %v3013_v39, 0.0 }
 0x631   :  { %v3017_v58 = vpop.eup %3016  ;;  %v1161_v42 = vsel %vm1153_vm7, %v3015_v40, 0.0  ;;  %v1167_v51 = vmul.f32 %v3011_v45, %v1163_v41 }
 0x632   :  { %v3019_v59 = vpop.eup %3018  ;;  %v1165_v62 = vmul.f32 %v3007_v26, %v1161_v42  ;;  %v1164_v43 = vsel %vm1156_vm9, %v3017_v58, 0.0 }
 0x633   :  { %v1162_v46 = vsel %vm1154_vm10, %v3019_v59, 0.0  ;;  %v1168_v53 = vmul.f32 %v3009_v61, %v1164_v43  ;;  %v1176_v54 = vsel %vm1169_vm8, %v1167_v51, 0.0 }
 0x634   :  { %v1170_v47 = vsel %vm1169_vm8, %v1165_v62, 0.0  ;;  %v1166_v48 = vmul.f32 %v3005_v15, %v1162_v46  ;;  %v2498_v62 = vld [vmem:[%s4048_s11] ss:$0 sm:$0xff] }
 0x635   :  { %1171 = vadd.xlane.f32.xlu1 %v1170_v47  ;;  %v1179_v55 = vsel %vm1169_vm8, %v1168_v53, 0.0 }
 0x636   :  { %v1173_v52 = vsel %vm1169_vm8, %v1166_v48, 0.0 }
 0x637   :  { %1174 = vadd.xlane.f32.xlu0 %v1173_v52 }
 0x639   :  { %1177 = vadd.xlane.f32.xlu1 %v1176_v54 }
 0x63b   :  { %1180 = vadd.xlane.f32.xlu0 %v1179_v55 }
 0x6c2   :  { %v1172_v56 = vpop.xlane.xlu1 %1171 }
 0x6c3   :  { %v1182_v60 = vmul.f32 0.013888889, %v1172_v56 }
 0x6c4   :  { %v1175_v4 = vpop.xlane.xlu0 %1174 }
 0x6c5   :  { %v1186_v7 = vmul.f32 %v1182_v60, %v3447_v35  ;;  %v1183_v10 = vmul.f32 0.013888889, %v1175_v4 }
 0x6c6   :  { %v1178_v9 = vpop.xlane.xlu1 %1177 }
 0x6c7   :  { %v1187_v63 = vmul.f32 %v1183_v10, %v3449_v36  ;;  %v1184_v11 = vmul.f32 0.013888889, %v1178_v9  ;;  %v1190_v15 = vmul.f32 %v1186_v7, %v3402_v13  ;;  %v1196_v61 = vmul.f32 %v1186_v7, %v3414_v19  ;;  %v2988_v19 = vld [vmem:[%s4047_s10 + $0x40] sm:$0xff]  }
 0x6c8   :  { %v1181_v21 = vpop.xlane.xlu0 %1180 }
 0x6c9   :  { %v1191_v23 = vmul.f32 %v1187_v63, %v3408_v16  ;;  %v1197_v26 = vmul.f32 %v1187_v63, %v3420_v22  ;;  %v1188_v27 = vmul.f32 %v1184_v11, %v3479_v49  ;;  %v1185_v44 = vmul.f32 0.013888889, %v1181_v21  ;;  %v2993_v49 = vld [vmem:[%s4047_s10 + $0x10] sm:$0xff]  }
 0x6cb   :  { %v1194_v8 = vpack.c.bf16 %v1191_v23, %v1190_v15  ;;  %v1189_v35 = vmul.f32 %v1185_v44, %v3481_v50  ;;  %v1200_v45 = vpack.c.bf16 %v1197_v26, %v1196_v61  ;;  %v1192_v29 = vmul.f32 %v3400_v12, %v1188_v27  ;;  %v2989_v12 = vld [vmem:[%s4047_s10] sm:$0xff]   ;;  %v2994_v50 = vld [vmem:[%s4047_s10 + $0x58] sm:$0xff]  }
 0x6cc   :  { %v1198_v36 = vmul.f32 %v3412_v18, %v1188_v27  ;;  %v2991_v18 = vld [vmem:[%s4047_s10 + $0x8] sm:$0xff]  }
 0x6cd   :  { %v1193_v13 = vmul.f32 %v3404_v14, %v1189_v35  ;;  %v1199_v24 = vmul.f32 %v3416_v20, %v1189_v35  ;;  %1202 = vmatprep.subr.bf16.mxu0 %v1200_v45  ;;  %v2990_v14 = vld [vmem:[%s4047_s10 + $0x48] sm:$0xff]   ;;  %v2992_v20 = vld [vmem:[%s4047_s10 + $0x50] sm:$0xff]  }
 0x6ce   :  { %1203 = vmatpush1.bf16.msra.mxu0 %v1194_v8 }
 0x6cf   :  { %v1195_v16 = vpack.c.bf16 %v1193_v13, %v1192_v29  ;;  %v1201_v22 = vpack.c.bf16 %v1199_v24, %v1198_v36 }
 0x6d1   :  { %1204 = vmatprep.subr.bf16.mxu0 %v1201_v22 }
 0x6d2   :  { %1205 = vmatpush1.bf16.msra.mxu0 %v1195_v16 }
 0x6d3   :  { %2624 = vmatprep.subr.bf16.mxu0 %v2988_v19 }
 0x6d5   :  { %2497 = vmatmul.mubr.msk.bf16.vlgmr.msra.gmra.mrb[4].mxu0 %vm1051_vm4, %v3608_v30  ;;  %v2995_v30 = vld [vmem:[%s4047_s10 + $0x18] sm:$0xff]  }
 0x6d6   :  { %2625 = vmatpush3.bf16.msra.mxu0 %v2989_v12 }
 0x6d7   :  { %2626 = vmatprep.subr.bf16.mxu0 %v2990_v14 }
 0x6da   :  { %2627 = vmatpush3.bf16.msra.mxu0 %v2991_v18 }
 0x6db   :  { %2628 = vmatprep.subr.bf16.mxu0 %v2992_v20 }
 0x6de   :  { %2629 = vmatpush3.bf16.msra.mxu0 %v2993_v49 }
 0x6df   :  { %2630 = vmatprep.subr.bf16.mxu0 %v2994_v50 }
 0x6e2   :  { %2631 = vmatpush3.bf16.msra.mxu0 %v2995_v30 }
 0x6e3   :  { %2632 = vmatprep.subr.bf16.mxu0 %v2996_v31 }
 0x6e6   :  { %2633 = vmatpush3.bf16.msra.mxu0 %v2997_v32 }
 0x6e7   :  { %2634 = vmatprep.subr.bf16.mxu0 %v2998_v33 }
 0x6ea   :  { %2635 = vmatpush3.bf16.msra.mxu0 %v2999_v34 }
 0x6eb   :  { %2636 = vmatprep.subr.bf16.mxu0 %v3000_v37 }
 0x6ee   :  { %2637 = vmatpush3.bf16.msra.mxu0 %v3001_v17 }
 0x6ef   :  { %2638 = vmatprep.subr.bf16.mxu0 %v3002_v38 }
 0x6f2   :  { %2639 = vmatpush3.bf16.msra.mxu0 %v3003_v0 }
 0x7a8   :  { %v1236_v57 = vpop.f32.mrb[4].mxu0 }
 0x7a9   :  { %v1238_v39 = vpop.f32.mrb[5].mxu0  ;;  %v1243_v41 = vpack.c.bf16 %v1236_v57, %v1236_v57 }
 0x7aa   :  { %v1244_v40 = vpack.c.bf16 %v1238_v39, %v1238_v39  ;;  %v1240_v58 = vpop.f32.mrb[6].mxu0 }
 0x7ab   :  { %v1241_v42 = vpop.f32.mrb[7].mxu0 }
 0x7ac   :  { %1379 = vmatprep.mubr.bf16.mxu0 %v1244_v40 }
 0x7ad   :  { %1380 = vmatmul.mubr.bf16.vlgmr.msra.gmra.mrb[8].mxu0 %v1243_v41 }
 0x880   :  { %v2640_v59 = vpop.f32.mrb[8].mxu0 }
 0x881   :  { %v2641_v43 = vpop.f32.mrb[9].mxu0 }
 0x882   :  { %v2642_v46 = vadd.f32 %v2641_v43, %v2640_v59  ;;  %v2643_v47 = vpop.f32.mrb[10].mxu0 }
 0x883   :  { %v2644_v48 = vpop.f32.mrb[11].mxu0 }
 0x884   :  { %v1382_v51 = vadd.f32 %v2642_v46, %v2498_v62 }
 0x886   :  { %v1387_v52 = vmax.f32 %v1382_v51, 0.0 }
 0x888   :  { %v1388_v53 = vmul.f32 %v1387_v52, %v1387_v52 }
 0x88a   :  { %1389 = vadd.xlane.f32.xlu1 %v1388_v53 }
 0x917   :  { %v1390_v54 = vpop.xlane.xlu1 %1389 }
 0x918   :  { %3020 = vrsqrt.f32 %v1390_v54  ;;  %vm1391_vm11 = vcmp.eq.f32.partialorder %v1390_v54, 0.0 }
 0x922   :  { %v3021_v55 = vpop.eup %3020 }
 0x923   :  { %v1393_v56 = vsel %vm1391_vm11, 1.0, %v3021_v55 }
 0x924   :  { %v1394_v60 = vmul.f32 %v1393_v56, %v1387_v52 }
 0x925   :  { %3110 = dma.done.wait [#allocation3 + $0x1], 256 }
 0x926   :  { %3111 = vsyncadd [#allocation3 + $0x1], 4294967040  ;;  %2818 = vmatprep.subr.bf16.mxu0 %v3114_v5  ;;  %2834 = vmatprep.mubr.msk.bf16.mxu0 %vm3115_vm0, %v3114_v5  ;;  %v3028_v4 = vld [vmem:[%s4052_s15] sm:$0xff]   ;;  %v3029_v7 = vld [vmem:[%s4052_s15 + $0x8] sm:$0xff]   ;;  %v1501_v61 = vpack.c.bf16 %v1394_v60, %v1394_v60  ;;  %vm2015_vm6 = vcmask 31744   ;;  %vm2145_vm7 = vcmask 1041408  }
 0x927   :  { %3022 = vset.pattern.permute.xlu0 %v3116_v6  ;;  %3023 = vset.pattern.permute.xlu1 %v3116_v6  ;;  %v3030_v10 = vld [vmem:[%s4052_s15 + $0x10] sm:$0xff]   ;;  %v3031_v9 = vld [vmem:[%s4052_s15 + $0x18] sm:$0xff]   ;;  %v1398_v63 = vld [vmem:[%s4049_s12] sm:$0xff] }
 0x928   :  { %2838 = vmatprep.subr.bf16.mxu1 %v3114_v5  ;;  %2840 = vmatprep.mubr.msk.bf16.mxu1 %vm3115_vm0, %v3114_v5  ;;  %v1400_v11 = vld [vmem:[%s4050_s13] sm:$0xff]  ;;  %v1399_v15 = vld [vmem:[%s4049_s12 + $0x8] sm:$0xff]  ;;  %v3034_v27 = vld [vmem:[%s4052_s15 + $0x30] sm:$0xff]   ;;  %v1683_v37 = vsel %vm1100_vm5, %v1501_v61, 0 }
 0x929   :  { %2819 = vmatpush3.bf16.msra.mxu0 %v3028_v4  ;;  %1603 = vperm.xlu0 %3022, %v1398_v63   ;;  %v1401_v21 = vld [vmem:[%s4050_s13 + $0x8] sm:$0xff]  ;;  %v3032_v23 = vld [vmem:[%s4052_s15 + $0x20] sm:$0xff]   ;;  %v3035_v44 = vld [vmem:[%s4052_s15 + $0x38] sm:$0xff]  }
 0x92a   :  { %2820 = vmatprep.subr.bf16.mxu0 %v3114_v5  ;;  %1614 = vperm.xlu1 %3023, %v1400_v11   ;;  %v3033_v26 = vld [vmem:[%s4052_s15 + $0x28] sm:$0xff]   ;;  %v3036_v8 = vld [vmem:[%s4055_s18] sm:$0xff]   ;;  %v3038_v45 = vld [vmem:[%s4055_s18 + $0x10] sm:$0xff]  }
 0x92b   :  { %v3037_v35 = vld [vmem:[%s4055_s18 + $0x8] sm:$0xff]   ;;  %v3039_v29 = vld [vmem:[%s4055_s18 + $0x18] sm:$0xff]   ;;  %v3040_v36 = vld [vmem:[%s4055_s18 + $0x20] sm:$0xff]  }
 0x92c   :  { %v2515_v24 = vld [vmem:[%s4053_s16] ss:$0 sm:$0xff]  ;;  %v3041_v39 = vld [vmem:[%s4055_s18 + $0x28] sm:$0xff]   ;;  %v3042_v40 = vld [vmem:[%s4055_s18 + $0x30] sm:$0xff]  }
 0x92d   :  { %2821 = vmatpush3.bf16.msra.mxu0 %v3029_v7  ;;  %1606 = vperm.xlu0 %3022, %v1399_v15   ;;  %v3043_v58 = vld [vmem:[%s4055_s18 + $0x38] sm:$0xff]   ;;  %v3044_v51 = vld [vmem:[%s4054_s17] sm:$0xff]   ;;  %v3045_v54 = vld [vmem:[%s4054_s17 + $0x8] sm:$0xff]  }
 0x92e   :  { %2822 = vmatprep.subr.bf16.mxu0 %v3114_v5  ;;  %1617 = vperm.xlu1 %3023, %v1401_v21   ;;  %v3046_v55 = vld [vmem:[%s4054_s17 + $0x10] sm:$0xff]   ;;  %v3047_v56 = vld [vmem:[%s4054_s17 + $0x18] sm:$0xff]   ;;  %v3048_v60 = vld [vmem:[%s4054_s17 + $0x20] sm:$0xff]  }
 0x92f   :  { %v3049_v4 = vld [vmem:[%s4054_s17 + $0x28] sm:$0xff]   ;;  %v3050_v7 = vld [vmem:[%s4054_s17 + $0x30] sm:$0xff]   ;;  %v3055_v15 = vld [vmem:[%s4056_s19 + $0x18] sm:$0xff]  }
 0x930   :  { %v3053_v63 = vld [vmem:[%s4056_s19 + $0x8] sm:$0xff]   ;;  %v3054_v11 = vld [vmem:[%s4056_s19 + $0x10] sm:$0xff]   ;;  %v3056_v21 = vld [vmem:[%s4056_s19 + $0x20] sm:$0xff]  }
 0x931   :  { %2823 = vmatpush3.bf16.msra.mxu0 %v3030_v10  ;;  %v3051_v10 = vld [vmem:[%s4054_s17 + $0x38] sm:$0xff]  }
 0x932   :  { %2824 = vmatprep.subr.bf16.mxu0 %v3114_v5 }
 0x935   :  { %2825 = vmatpush3.bf16.msra.mxu0 %v3031_v9  ;;  %v3052_v9 = vld [vmem:[%s4056_s19] sm:$0xff]  }
 0x936   :  { %2826 = vmatprep.subr.bf16.mxu0 %v3114_v5 }
 0x939   :  { %2827 = vmatpush3.bf16.msra.mxu0 %v3032_v23  ;;  %v3057_v23 = vld [vmem:[%s4056_s19 + $0x28] sm:$0xff]  }
 0x93a   :  { %2828 = vmatprep.subr.bf16.mxu0 %v3114_v5 }
 0x93d   :  { %2829 = vmatpush3.bf16.msra.mxu0 %v3033_v26  ;;  %v1597_v26 = vunpack.c.l.bf16 %v3248_v2 }
 0x93e   :  { %2830 = vmatprep.subr.bf16.mxu0 %v3114_v5 }
 0x941   :  { %2831 = vmatpush3.bf16.msra.mxu0 %v3034_v27  ;;  %v1598_v27 = vunpack.c.h.bf16 %v3248_v2 }
 0x942   :  { %2832 = vmatprep.subr.bf16.mxu0 %v3114_v5 }
 0x945   :  { %2833 = vmatpush3.bf16.msra.mxu0 %v3035_v44  ;;  %v3058_v44 = vld [vmem:[%s4056_s19 + $0x30] sm:$0xff]  }
 0x946   :  { %2850 = vmatprep.subr.bf16.mxu0 %v3114_v5 }
 0x948   :  { %2835 = vmatmul.mubr.bf16.vlgmr.msra.gmra.mrb[12].mxu0 %v1501_v61  ;;  %v3886_v61 = vmax.f32 %v1597_v26, 0.0 }
 0x949   :  { %2866 = vmatprep.mubr.msk.bf16.mxu0 %vm3115_vm0, %v3114_v5  ;;  %2851 = vmatpush3.bf16.msra.mxu0 %v3036_v8  ;;  %v3888_v8 = vmax.f32 %v1598_v27, 0.0 }
 0x94a   :  { %2852 = vmatprep.subr.bf16.mxu0 %v3114_v5 }
 0x94b   :  { %v1601_v2 = vpack.c.bf16 %v3888_v8, %v3886_v61 }
 0x94d   :  { %2853 = vmatpush3.bf16.msra.mxu0 %v3037_v35  ;;  %v3059_v35 = vld [vmem:[%s4056_s19 + $0x38] sm:$0xff]  }
 0x94e   :  { %2854 = vmatprep.subr.bf16.mxu0 %v3114_v5 }
 0x951   :  { %2855 = vmatpush3.bf16.msra.mxu0 %v3038_v45 }
 0x952   :  { %2856 = vmatprep.subr.bf16.mxu0 %v3114_v5 }
 0x955   :  { %2857 = vmatpush3.bf16.msra.mxu0 %v3039_v29 }
 0x956   :  { %2858 = vmatprep.subr.bf16.mxu0 %v3114_v5 }
 0x959   :  { %2859 = vmatpush3.bf16.msra.mxu0 %v3040_v36 }
 0x95a   :  { %2860 = vmatprep.subr.bf16.mxu0 %v3114_v5 }
 0x95d   :  { %2861 = vmatpush3.bf16.msra.mxu0 %v3041_v39 }
 0x95e   :  { %2862 = vmatprep.subr.bf16.mxu0 %v3114_v5 }
 0x961   :  { %2863 = vmatpush3.bf16.msra.mxu0 %v3042_v40 }
 0x962   :  { %2864 = vmatprep.subr.bf16.mxu0 %v3114_v5 }
 0x965   :  { %2865 = vmatpush3.bf16.msra.mxu0 %v3043_v58 }
 0x966   :  { %2870 = vmatprep.subr.bf16.mxu0 %v3114_v5 }
 0x9a8   :  { %v1604_v13 = vpop.permute.xlu0 %1603 }
 0x9a9   :  { %v1615_v18 = vpop.permute.xlu1 %1614  ;;  %vm1608_vm12 = vcmp.eq.s32.totalorder %v3318_v25, %v1604_v13 }
 0x9aa   :  { %v1610_v30 = vsel %vm1608_vm12, 1.0, %v3114_v5  ;;  %vm3772_vm14 = vcmp.eq.s32.totalorder %v3318_v25, %v1615_v18 }
 0x9ab   :  { %v1621_v0 = vsel %vm3772_vm14, 1.0, %v3114_v5 }
 0x9ac   :  { %v1607_v22 = vpop.permute.xlu0 %1606 }
 0x9ad   :  { %vm1609_vm13 = vcmp.eq.s32.totalorder %v3318_v25, %v1607_v22  ;;  %v1618_v33 = vpop.permute.xlu1 %1617 }
 0x9ae   :  { %v1611_v31 = vsel %vm1609_vm13, 1.0, %v3114_v5  ;;  %vm3777_vm3 = vcmp.eq.s32.totalorder %v3318_v25, %v1618_v33 }
 0x9af   :  { %v1612_v34 = vpack.c.bf16 %v1611_v31, %v1610_v30  ;;  %v1622_v57 = vsel %vm3777_vm3, 1.0, %v3114_v5 }
 0x9b0   :  { %v3791_v25 = vpack.c.bf16 %v1622_v57, %v1621_v0 }
 0xa1b   :  { %v1590_v16 = vpop.f32.mrb[12].mxu0 }
 0xa1c   :  { %v1591_v19 = vadd.f32 %v2515_v24, %v1590_v16  ;;  %v2836_v12 = vpop.f32.mrb[13].mxu0 }
 0xa1d   :  { %v1593_v14 = vpop.f32.mrb[14].mxu0 }
 0xa1e   :  { %v1596_v20 = vmax.f32 %v1591_v19, 0.0  ;;  %v2837_v49 = vpop.f32.mrb[15].mxu0 }
 0xa20   :  { %v1631_v50 = vpack.c.bf16 %v1596_v20, %v1596_v20 }
 0xa22   :  { %v1636_v32 = vsel %vm1100_vm5, %v1631_v50, 0 }
 0xa23   :  { %2839 = vmatpush3.bf16.msra.mxu1 %v1636_v32 }
 0xa24   :  { %2844 = vmatprep.subr.bf16.mxu1 %v3114_v5 }
 0xa26   :  { %2841 = vmatmul.mubr.msk.bf16.vlgmr.msra.gmra.mrb[20].mxu1 %vm899_vm15, %v1612_v34 }
 0xa27   :  { %2845 = vmatpush3.bf16.msra.mxu1 %v1683_v37  ;;  %2846 = vmatprep.mubr.msk.bf16.mxu1 %vm3115_vm0, %v3114_v5 }
 0xa28   :  { %2910 = vmatprep.subr.bf16.mxu1 %v3114_v5 }
 0xa2e   :  { %2847 = vmatmul.mubr.msk.bf16.vlgmr.msra.gmra.mrb[24].mxu1 %vm899_vm15, %v3791_v25 }
 0xa2f   :  { %2912 = vmatprep.mubr.msk.bf16.mxu1 %vm3115_vm0, %v3114_v5 }
 0xaf9   :  { %v3809_v41 = vpop.f32.mrb[20].mxu1 }
 0xafa   :  { %v2842_v42 = vpop.f32.mrb[21].mxu1 }
 0xafb   :  { %v3811_v59 = vpop.f32.mrb[22].mxu1 }
 0xafc   :  { %v1726_v62 = vpack.c.bf16 %v3811_v59, %v3809_v41  ;;  %v2843_v43 = vpop.f32.mrb[23].mxu1 }
 0xb01   :  { %v3815_v46 = vpop.f32.mrb[24].mxu1 }
 0xb02   :  { %v2848_v47 = vpop.f32.mrb[25].mxu1 }
 0xb03   :  { %v3817_v48 = vpop.f32.mrb[26].mxu1 }
 0xb04   :  { %v1727_v52 = vpack.c.bf16 %v3817_v48, %v3815_v46  ;;  %v2849_v53 = vpop.f32.mrb[27].mxu1 }
 0xb06   :  { %2867 = vmatmul.mubr.bf16.vlgmr.msra.gmra.mrb[16].mxu0 %v1727_v52 }
 0xb07   :  { %2871 = vmatpush3.bf16.msra.mxu0 %v3044_v51  ;;  %2886 = vmatprep.mubr.msk.bf16.mxu0 %vm3115_vm0, %v3114_v5 }
 0xb08   :  { %2872 = vmatprep.subr.bf16.mxu0 %v3114_v5 }
 0xb0b   :  { %2873 = vmatpush3.bf16.msra.mxu0 %v3045_v54 }
 0xb0c   :  { %2874 = vmatprep.subr.bf16.mxu0 %v3114_v5 }
 0xb0f   :  { %2875 = vmatpush3.bf16.msra.mxu0 %v3046_v55 }
 0xb10   :  { %2876 = vmatprep.subr.bf16.mxu0 %v3114_v5 }
 0xb13   :  { %2877 = vmatpush3.bf16.msra.mxu0 %v3047_v56 }
 0xb14   :  { %2878 = vmatprep.subr.bf16.mxu0 %v3114_v5 }
 0xb17   :  { %2879 = vmatpush3.bf16.msra.mxu0 %v3048_v60 }
 0xb18   :  { %2880 = vmatprep.subr.bf16.mxu0 %v3114_v5 }
 0xb1b   :  { %2881 = vmatpush3.bf16.msra.mxu0 %v3049_v4 }
 0xb1c   :  { %2882 = vmatprep.subr.bf16.mxu0 %v3114_v5 }
 0xb1f   :  { %2883 = vmatpush3.bf16.msra.mxu0 %v3050_v7 }
 0xb20   :  { %2884 = vmatprep.subr.bf16.mxu0 %v3114_v5 }
 0xb23   :  { %2885 = vmatpush3.bf16.msra.mxu0 %v3051_v10 }
 0xb24   :  { %2890 = vmatprep.subr.bf16.mxu0 %v3114_v5 }
 0xb26   :  { %2887 = vmatmul.mubr.bf16.vlgmr.msra.gmra.mrb[16].mxu0 %v1726_v62 }
 0xb27   :  { %2891 = vmatpush3.bf16.msra.mxu0 %v3052_v9  ;;  %2906 = vmatprep.mubr.msk.bf16.mxu0 %vm3115_vm0, %v3114_v5 }
 0xb28   :  { %2892 = vmatprep.subr.bf16.mxu0 %v3114_v5 }
 0xb2b   :  { %2893 = vmatpush3.bf16.msra.mxu0 %v3053_v63 }
 0xb2c   :  { %2894 = vmatprep.subr.bf16.mxu0 %v3114_v5 }
 0xb2f   :  { %2895 = vmatpush3.bf16.msra.mxu0 %v3054_v11 }
 0xb30   :  { %2896 = vmatprep.subr.bf16.mxu0 %v3114_v5 }
 0xb33   :  { %2897 = vmatpush3.bf16.msra.mxu0 %v3055_v15 }
 0xb34   :  { %2898 = vmatprep.subr.bf16.mxu0 %v3114_v5 }
 0xb37   :  { %2899 = vmatpush3.bf16.msra.mxu0 %v3056_v21 }
 0xb38   :  { %2900 = vmatprep.subr.bf16.mxu0 %v3114_v5 }
 0xb3b   :  { %2901 = vmatpush3.bf16.msra.mxu0 %v3057_v23 }
 0xb3c   :  { %2902 = vmatprep.subr.bf16.mxu0 %v3114_v5 }
 0xb3f   :  { %2903 = vmatpush3.bf16.msra.mxu0 %v3058_v44 }
 0xb40   :  { %2904 = vmatprep.subr.bf16.mxu0 %v3114_v5 }
 0xb43   :  { %2905 = vmatpush3.bf16.msra.mxu0 %v3059_v35 }
 0xb46   :  { %2907 = vmatmul.mubr.bf16.vlgmr.msra.gmra.mrb[16].mxu0 %v1601_v2 }
 0xc19   :  { %v1988_v45 = vpop.f32.mrb[16].mxu0 }
 0xc1a   :  { %vm1997_vm15 = vcmp.ge.f32.partialorder %v1988_v45, 0.0  ;;  %v1999_v29 = vmul.f32 0.01, %v1988_v45  ;;  %v2908_v36 = vpop.f32.mrb[17].mxu0 }
 0xc1b   :  { %v1991_v13 = vpop.f32.mrb[18].mxu0 }
 0xc1c   :  { %vm1998_vm4 = vcmp.ge.f32.partialorder %v1991_v13, 0.0  ;;  %v2000_v24 = vmul.f32 0.01, %v1991_v13  ;;  %v2909_v16 = vpop.f32.mrb[19].mxu0  ;;  %v3896_v22 = vsel %vm1997_vm15, %v1988_v45, %v1999_v29 }
 0xc1d   :  { %2005 = vperm.xlu0 %3022, %v3896_v22  }
 0xc1e   :  { %v3899_v19 = vsel %vm1998_vm4, %v1991_v13, %v2000_v24 }
 0xc1f   :  { %2010 = vperm.xlu1 %3023, %v3899_v19  }
 0xc21   :  { %3024 = vset.pattern.permute.xlu0 %v3117_v1 }
 0xc22   :  { %2034 = vperm.xlu0 %3024, %v3896_v22  }
 0xc23   :  { %3025 = vset.pattern.permute.xlu1 %v3117_v1 }
 0xc24   :  { %2038 = vperm.xlu1 %3025, %v3899_v19  }
 0xc26   :  { %3027 = vset.pattern.permute.xlu0 %v3118_v3 }
 0xc27   :  { %2065 = vperm.xlu0 %3027, %v3899_v19  }
 0xc28   :  { %3026 = vset.pattern.permute.xlu1 %v3118_v3 }
 0xc29   :  { %2061 = vperm.xlu1 %3026, %v3896_v22  }
 0xc9c   :  { %v2006_v12 = vpop.permute.xlu0 %2005 }
 0xc9d   :  { %v2013_v14 = vsel %vm3772_vm14, %v2006_v12, -1e+30 }
 0xc9e   :  { %v2011_v18 = vpop.permute.xlu1 %2010  ;;  %v2016_v1 = vsel %vm2015_vm6, %v2013_v14, -inf }
 0xc9f   :  { %v2014_v20 = vsel %vm3777_vm3, %v2011_v18, -1e+30 }
 0xca0   :  { %v2017_v49 = vsel %vm2015_vm6, %v2014_v20, -inf }
 0xca1   :  { %v2018_v50 = vmax.f32 %v2016_v1, %v2017_v49  ;;  %v2035_v30 = vpop.permute.xlu0 %2034 }
 0xca2   :  { %v2041_v3 = vsel %vm3772_vm14, %v2035_v30, -1e+30 }
 0xca3   :  { %v2019_v31 = vrot.slane %v2018_v50, 4  ;;  %v2039_v32 = vpop.permute.xlu1 %2038  ;;  %v2043_v37 = vsel %vm2015_vm6, %v2041_v3, -inf }
 0xca4   :  { %v2042_v33 = vsel %vm3777_vm3, %v2039_v32, -1e+30 }
 0xca5   :  { %v2020_v34 = vmax.f32 %v2018_v50, %v2019_v31  ;;  %v2044_v0 = vsel %vm2015_vm6, %v2042_v33, -inf }
 0xca6   :  { %v2045_v57 = vmax.f32 %v2043_v37, %v2044_v0  ;;  %v2066_v39 = vpop.permute.xlu0 %2065  ;;  %v2524_v37 = vld [vmem:[%s4051_s14] ss:$0 sm:$0xff] }
 0xca7   :  { %v2021_v40 = vrot.slane %v2020_v34, 2  ;;  %v2069_v58 = vsel %vm3777_vm3, %v2066_v39, -1e+30 }
 0xca8   :  { %v2046_v42 = vrot.slane %v2045_v57, 4  ;;  %v2062_v62 = vpop.permute.xlu1 %2061  ;;  %v2071_v52 = vsel %vm2015_vm6, %v2069_v58, -inf }
 0xca9   :  { %v2068_v43 = vsel %vm3772_vm14, %v2062_v62, -1e+30  ;;  %v2022_v47 = vmax.f32 %v2020_v34, %v2021_v40 }
 0xcaa   :  { %v2047_v51 = vmax.f32 %v2045_v57, %v2046_v42  ;;  %v2070_v53 = vsel %vm2015_vm6, %v2068_v43, -inf }
 0xcab   :  { %v2072_v54 = vmax.f32 %v2070_v53, %v2071_v52  ;;  %v2023_v55 = vrot.slane %v2022_v47, 1 }
 0xcac   :  { %v2048_v56 = vrot.slane %v2047_v51, 2 }
 0xcad   :  { %v2073_v60 = vrot.slane %v2072_v54, 4  ;;  %v2024_v4 = vmax.f32 %v2022_v47, %v2023_v55 }
 0xcae   :  { %v2049_v7 = vmax.f32 %v2047_v51, %v2048_v56 }
 0xcaf   :  { %v2074_v10 = vmax.f32 %v2072_v54, %v2073_v60  ;;  %v2026_v9 = vsel %vm3777_vm3, %v2024_v4, 0.0  ;;  %v2025_v63 = vsel %vm3772_vm14, %v2024_v4, 0.0 }
 0xcb0   :  { %v2030_v11 = vsel %vm2015_vm6, %v2026_v9, 0.0  ;;  %v2027_v15 = vsel %vm2015_vm6, %v2025_v63, 0.0  ;;  %v2050_v21 = vrot.slane %v2049_v7, 1 }
 0xcb1   :  { %v2075_v23 = vrot.slane %v2074_v10, 2  ;;  %2031 = vadd.xlane.f32.xlu0 %v2030_v11  ;;  %2028 = vadd.xlane.f32.xlu1 %v2027_v15 }
 0xcb2   :  { %v2051_v26 = vmax.f32 %v2049_v7, %v2050_v21 }
 0xcb3   :  { %v2076_v27 = vmax.f32 %v2074_v10, %v2075_v23 }
 0xcb4   :  { %v2053_v44 = vsel %vm3777_vm3, %v2051_v26, 0.0  ;;  %v2052_v35 = vsel %vm3772_vm14, %v2051_v26, 0.0 }
 0xcb5   :  { %v2057_v2 = vsel %vm2015_vm6, %v2053_v44, 0.0  ;;  %v2054_v45 = vsel %vm2015_vm6, %v2052_v35, 0.0  ;;  %v2077_v29 = vrot.slane %v2076_v27, 1 }
 0xcb6   :  { %2058 = vadd.xlane.f32.xlu0 %v2057_v2  ;;  %2055 = vadd.xlane.f32.xlu1 %v2054_v45  ;;  %v3060_v2 = vld [vmem:[%s4057_s20 + $0x40] sm:$0xff]   ;;  %v3067_v45 = vld [vmem:[%s4057_s20 + $0x18] sm:$0xff]  }
 0xcb7   :  { %v2078_v36 = vmax.f32 %v2076_v27, %v2077_v29  ;;  %v3068_v29 = vld [vmem:[%s4057_s20 + $0x60] sm:$0xff]  }
 0xcb9   :  { %v2080_v13 = vsel %vm3777_vm3, %v2078_v36, 0.0  ;;  %v2079_v24 = vsel %vm3772_vm14, %v2078_v36, 0.0  ;;  %v3069_v36 = vld [vmem:[%s4057_s20 + $0x20] sm:$0xff]  }
 0xcba   :  { %v2084_v16 = vsel %vm2015_vm6, %v2080_v13, 0.0  ;;  %v2081_v12 = vsel %vm2015_vm6, %v2079_v24, 0.0  ;;  %v3070_v13 = vld [vmem:[%s4057_s20 + $0x68] sm:$0xff]  }
 0xcbb   :  { %2085 = vadd.xlane.f32.xlu0 %v2084_v16  ;;  %2082 = vadd.xlane.f32.xlu1 %v2081_v12  ;;  %v3071_v24 = vld [vmem:[%s4057_s20 + $0x28] sm:$0xff]   ;;  %v3072_v16 = vld [vmem:[%s4057_s20 + $0x70] sm:$0xff]  }
 0xcbc   :  { %v3073_v12 = vld [vmem:[%s4057_s20 + $0x30] sm:$0xff]  }
 0xd3e   :  { %v2032_v14 = vpop.xlane.xlu0 %2031  ;;  %v2029_v18 = vpop.xlane.xlu1 %2028 }
 0xd43   :  { %v2059_v20 = vpop.xlane.xlu0 %2058  ;;  %v2056_v1 = vpop.xlane.xlu1 %2055 }
 0xd44   :  { %v2088_v49 = vsel %vm1027_vm1, %v2032_v14, %v2059_v20  ;;  %v2087_v50 = vsel %vm1027_vm1, %v2029_v18, %v2056_v1  ;;  %vm1628_vm1 = vcmp.eq.s32.totalorder %v3601_v28, %v2524_v37  ;;  %v3074_v14 = vld [vmem:[%s4057_s20 + $0x78] sm:$0xff]  }
 0xd45   :  { %v1629_v57 = vsel %vm1628_vm1, 1.0, %v3114_v5  ;;  %v3075_v18 = vld [vmem:[%s4057_s20 + $0x38] sm:$0xff]  }
 0xd46   :  { %v1630_v58 = vpack.c.bf16 %v1629_v57, %v1629_v57 }
 0xd48   :  { %v2086_v30 = vpop.xlane.xlu0 %2085  ;;  %v2083_v38 = vpop.xlane.xlu1 %2082 }
 0xd49   :  { %v2090_v3 = vsel %vm1032_vm2, %v2088_v49, %v2086_v30  ;;  %v2089_v17 = vsel %vm1032_vm2, %v2087_v50, %v2083_v38  ;;  %vm2098_vm2 = vcmask 130048  }
 0xd4a   :  { %v2092_v31 = vsub.f32 %v3899_v19, %v2090_v3  ;;  %v2091_v32 = vsub.f32 %v3896_v22, %v2089_v17  ;;  %v2554_v17 = vld [vmem:[%s4058_s21] ss:$0 sm:$0xff] }
 0xd4c   :  { %v2095_v33 = vmul.f32 1.442695, %v2092_v31  ;;  %v2093_v34 = vmul.f32 1.442695, %v2091_v32 }
 0xd4e   :  { %3076 = vpow2.f32 %v2095_v33 }
 0xd4f   :  { %3078 = vpow2.f32 %v2093_v34 }
 0xd58   :  { %v3077_v0 = vpop.eup %3076 }
 0xd59   :  { %v3079_v39 = vpop.eup %3078 }
 0xd5a   :  { %v2097_v40 = vpack.c.bf16 %v3077_v0, %v3079_v39 }
 0xd5c   :  { %2911 = vmatpush3.bf16.msra.mxu1 %v2097_v40 }
 0xd5d   :  { %2916 = vmatprep.subr.bf16.mxu1 %v3114_v5 }
 0xd5f   :  { %2913 = vmatmul.mubr.msk.bf16.vlgmr.msra.gmra.mrb[28].mxu1 %vm2098_vm2, %v1630_v58 }
 0xd60   :  { %2918 = vmatprep.mubr.msk.bf16.mxu1 %vm3115_vm0, %v3114_v5 }
 0xe32   :  { %v2136_v22 = vpop.f32.mrb[28].mxu1 }
 0xe33   :  { %v2142_v19 = vpack.c.bf16 %v2136_v22, %v2136_v22  ;;  %v2914_v42 = vpop.f32.mrb[29].mxu1 }
 0xe34   :  { %v2139_v28 = vpop.f32.mrb[30].mxu1 }
 0xe35   :  { %v2147_v62 = vsel %vm2145_vm7, %v2142_v19, 0  ;;  %v2915_v43 = vpop.f32.mrb[31].mxu1 }
 0xe36   :  { %2917 = vmatpush3.bf16.msra.mxu1 %v2147_v62 }
 0xe39   :  { %2919 = vmatmul.mubr.msk.bf16.vlgmr.msra.gmra.mrb[32].mxu1 %vm2015_vm6, %v3791_v25 }
 0xe3a   :  { %2246 = vmatprep.mubr.bf16.mxu1 %v3116_v6 }
 0xf0c   :  { %v2183_v47 = vpop.f32.mrb[32].mxu1 }
 0xf0d   :  { %3080 = vrcp.f32 %v2183_v47  ;;  %v2920_v51 = vpop.f32.mrb[33].mxu1  ;;  %vm2190_vm0 = vcmp.gt.f32.partialorder %v2183_v47, 0.0 }
 0xf0e   :  { %v2186_v52 = vpop.f32.mrb[34].mxu1 }
 0xf0f   :  { %3082 = vrcp.f32 %v2186_v52  ;;  %v2921_v53 = vpop.f32.mrb[35].mxu1  ;;  %vm2191_vm9 = vcmp.gt.f32.partialorder %v2186_v52, 0.0 }
 0xf17   :  { %v3081_v5 = vpop.eup %3080 }
 0xf18   :  { %v2194_v54 = vsel %vm2190_vm0, %v3081_v5, 0.0 }
 0xf19   :  { %v3083_v55 = vpop.eup %3082  ;;  %v2196_v56 = vmul.f32 %v3079_v39, %v2194_v54 }
 0xf1a   :  { %v2195_v60 = vsel %vm2191_vm9, %v3083_v55, 0.0 }
 0xf1b   :  { %v2198_v4 = vsel %vm1169_vm8, %v2196_v56, 0.0  ;;  %v2197_v7 = vmul.f32 %v3077_v0, %v2195_v60 }
 0xf1c   :  { %2199 = vadd.xlane.f32.xlu1 %v2198_v4 }
 0xf1d   :  { %v2201_v25 = vsel %vm1169_vm8, %v2197_v7, 0.0 }
 0xf1e   :  { %2202 = vadd.xlane.f32.xlu0 %v2201_v25 }
 0xfa9   :  { %v2200_v6 = vpop.xlane.xlu1 %2199 }
 0xfaa   :  { %v2204_v10 = vmul.f32 0.020833334, %v2200_v6 }
 0xfab   :  { %v2203_v9 = vpop.xlane.xlu0 %2202 }
 0xfac   :  { %v2206_v63 = vmul.f32 %v2204_v10, %v3886_v61  ;;  %v2205_v11 = vmul.f32 0.020833334, %v2203_v9  ;;  %v3061_v61 = vld [vmem:[%s4057_s20] sm:$0xff]  }
 0xfae   :  { %v2207_v15 = vmul.f32 %v2205_v11, %v3888_v8  ;;  %v2208_v21 = vmul.f32 %v2206_v63, %v3809_v41  ;;  %v2211_v23 = vmul.f32 %v2206_v63, %v3815_v46  ;;  %v3062_v41 = vld [vmem:[%s4057_s20 + $0x48] sm:$0xff]   ;;  %v3064_v46 = vld [vmem:[%s4057_s20 + $0x50] sm:$0xff]   ;;  %v3066_v8 = vld [vmem:[%s4057_s20 + $0x58] sm:$0xff]  }
 0xfb0   :  { %v2209_v26 = vmul.f32 %v2207_v15, %v3811_v59  ;;  %v2212_v27 = vmul.f32 %v2207_v15, %v3817_v48  ;;  %v3063_v59 = vld [vmem:[%s4057_s20 + $0x8] sm:$0xff]   ;;  %v3065_v48 = vld [vmem:[%s4057_s20 + $0x10] sm:$0xff]   ;;  %s3119_s20 = smov [#allocation4]  }
 0xfb1   :  { %s2415_s24 = sshll.u32 %s3119_s20, 4  ;;  %s2416_s24 = int_to_ptr.vmem [resolvable:$true] %s2415_s24 }
 0xfb2   :  { %v2210_v44 = vpack.c.bf16 %v2209_v26, %v2208_v21  ;;  %v2213_v35 = vpack.c.bf16 %v2212_v27, %v2211_v23  ;;  %s3086_s21 = scalar_lea.vmem %s2416_s24, 64  ;;  %p3091_p1 = scmp.lt.s32.totalorder %s2416_s24, %s2416_s24 }
 0xfb3   :  { %p3087_p0 = scmp.ne.s32.totalorder %s2416_s24, %s3086_s21  ;;  %p3092_p2 = scmp.lt.s32.totalorder %s3086_s21, %s3086_s21 }
 0xfb4   :  { %2214 = vmatprep.subr.bf16.mxu1 %v2213_v35 }
 0xfb5   :  { %2215 = vmatpush1.bf16.msra.mxu1 %v2210_v44  ;;  %p3093_p3 = por %p3092_p2, %p3091_p1 }
 0xfb6   :  { %2690 = vmatprep.subr.bf16.mxu1 %v3060_v2 }
 0xfb7   :  { %p3094_p4 = pnand %p3093_p3, %p3087_p0 }
 0xfb8   :  { %2553 = vmatmul.mubr.msk.bf16.vlgmr.msra.gmra.mrb[36].mxu1 %vm2098_vm2, %v1630_v58 }
 0xfb9   :  { %2691 = vmatpush3.bf16.msra.mxu1 %v3061_v61 }
 0xfba   :  { %2692 = vmatprep.subr.bf16.mxu1 %v3062_v41 }
 0xfbd   :  { %2693 = vmatpush3.bf16.msra.mxu1 %v3063_v59 }
 0xfbe   :  { %2694 = vmatprep.subr.bf16.mxu1 %v3064_v46 }
 0xfc1   :  { %2695 = vmatpush3.bf16.msra.mxu1 %v3065_v48 }
 0xfc2   :  { %2696 = vmatprep.subr.bf16.mxu1 %v3066_v8 }
 0xfc5   :  { %2697 = vmatpush3.bf16.msra.mxu1 %v3067_v45 }
 0xfc6   :  { %2698 = vmatprep.subr.bf16.mxu1 %v3068_v29 }
 0xfc9   :  { %2699 = vmatpush3.bf16.msra.mxu1 %v3069_v36 }
 0xfca   :  { %2700 = vmatprep.subr.bf16.mxu1 %v3070_v13 }
 0xfcd   :  { %2701 = vmatpush3.bf16.msra.mxu1 %v3071_v24 }
 0xfce   :  { %2702 = vmatprep.subr.bf16.mxu1 %v3072_v16 }
 0xfd1   :  { %2703 = vmatpush3.bf16.msra.mxu1 %v3073_v12 }
 0xfd2   :  { %2704 = vmatprep.subr.bf16.mxu1 %v3074_v14 }
 0xfd5   :  { %2705 = vmatpush3.bf16.msra.mxu1 %v3075_v18 }
0x108b   :  { %v2248_v20 = vpop.f32.mrb[36].mxu1 }
0x108c   :  { %v2250_v1 = vpop.f32.mrb[37].mxu1  ;;  %v2255_v30 = vpack.c.bf16 %v2248_v20, %v2248_v20 }
0x108d   :  { %v2256_v49 = vpack.c.bf16 %v2250_v1, %v2250_v1  ;;  %v2252_v50 = vpop.f32.mrb[38].mxu1 }
0x108e   :  { %v2253_v38 = vpop.f32.mrb[39].mxu1 }
0x108f   :  { %2391 = vmatprep.mubr.bf16.mxu1 %v2256_v49 }
0x1090   :  { %2392 = vmatmul.mubr.bf16.vlgmr.msra.gmra.mrb[40].mxu1 %v2255_v30 }
0x1163   :  { %v2706_v3 = vpop.f32.mrb[40].mxu1 }
0x1164   :  { %v2707_v31 = vpop.f32.mrb[41].mxu1 }
0x1165   :  { %v2708_v32 = vadd.f32 %v2707_v31, %v2706_v3  ;;  %v2709_v33 = vpop.f32.mrb[42].mxu1 }
0x1166   :  { %v2710_v34 = vpop.f32.mrb[43].mxu1 }
0x1167   :  { %v2394_v37 = vadd.f32 %v2708_v32, %v2554_v17 }
0x1169   :  { %v2399_v0 = vmax.f32 %v2394_v37, 0.0 }
0x116b   :  { %v2400_v57 = vmul.f32 %v2399_v0, %v2399_v0 }
0x116d   :  { %v2401_v39 = vsel %vm1100_vm5, %v2400_v57, 0.0 }
0x116e   :  { %2402 = vadd.xlane.f32.xlu1 %v2401_v39 }
0x11fb   :  { %v2403_v40 = vpop.xlane.xlu1 %2402 }
0x11fc   :  { %3084 = vrsqrt.f32 %v2403_v40  ;;  %vm2404_vm8 = vcmp.eq.f32.partialorder %v2403_v40, 0.0 }
0x1206   :  { %v3085_v58 = vpop.eup %3084 }
0x1207   :  { %v2406_v22 = vsel %vm2404_vm8, 1.0, %v3085_v58 }
0x1208   :  { %v2407_v19 = vmul.f32 %v2406_v22, %v2399_v0 }
0x120a   :  { %2408 = vst [vmem:[#allocation4] sm:$0xf] %v2407_v19 }
0x120b   :  { %3097 = shalt.err (!%p3094_p4)
}
0x120c   :  { %s3098_s25 = scalar_lea.hbm %s4059_s22, 64 }
0x120d   :  { %p3099_p5 = scmp.ne.s32.totalorder %s4059_s22, %s3098_s25  ;;  %p3102_p6 = scmp.lt.u32.totalorder %s3098_s25, %s4059_s22 }
0x120f   :  { %p3104_p7 = pnand %p3102_p6, %p3099_p5 }
0x1211   :  { %3107 = shalt.err (!%p3104_p7)
}
0x1212   :  { %2418 = dma.vmem_to_hbm [thread:$0]  %s2416_s24, 64, %s4059_s22, [#allocation5]  }
0x1213   :  { %3112 = dma.done.wait [#allocation5], 64  }
0x1214   :  { %3113 = vsyncadd [#allocation5], 4294967232 }
0x1215   :  { %2422 = vsyncpa [#allocation5], 1 }
0x1216   :  { %2423 = vsyncmov [#allocation3] }
0x1219   :  { %s2424_s29 = vpop.sfrf %2423 }
0x121a   :  { %p2571_p8 = scmp.ne.s32.totalorder %s2424_s29, 0 }
0x121c   :  { %2428 = shalt.err (%p2571_p8)  }
0x121d   :  { %2430 = vsyncmov [#allocation3 + $0x1] }
0x1220   :  { %s2431_s30 = vpop.sfrf %2430 }
0x1221   :  { %p2572_p9 = scmp.ne.s32.totalorder %s2431_s30, 0 }
0x1223   :  { %2435 = shalt.err (%p2572_p9)  }

</bundles_post_ra>
